<compile_context>
chip_gen: v7x
topology: tpu7x:2x2x1
jax: 0.10.0
libtpu: 0.0.40
codegen_flags: <defaults>
</compile_context>

<pallas_src>
import jax
import jax.numpy as jnp
from jax import lax
from jax.experimental import pallas as pl
from jax.experimental.pallas import tpu as pltpu


def gsmua_kernel(e1_ref, e2_ref, w_ref, wc_ref, sc_ref, out_ref):
    f32 = jnp.float32
    hi = lax.Precision.HIGHEST
    # Contract the feature dim of both operands: (64, D) x (TB, D) -> (64, TB).
    dn = (((1,), (1,)), ((), ()))

    e1 = e1_ref[...]                       # (TB, D) natural layout, straight from HBM
    e2 = e2_ref[...]                       # (TB, D)

    w = w_ref[...]                         # (192, D) resident weight slab
    wa1 = w[0:64]                          # attention  Linear(D, 64).weight   (out, in)
    ws1a = w[64:128]                       # similarity Linear(2D,64).weight[:, :D]
    ws1b = w[128:192]                      # similarity Linear(2D,64).weight[:, D:]

    wc = wc_ref[...]                       # (64, 4) packed column vectors
    ba1 = wc[:, 0:1]                       # attention  Linear(D, 64).bias
    wa2 = wc[:, 1:2]                       # attention  Linear(64, 1).weight
    bs1 = wc[:, 2:3]                       # similarity Linear(2D,64).bias
    ws2 = wc[:, 3:4]                       # similarity Linear(64, 1).weight
    ba2 = sc_ref[0]                        # attention  Linear(64, 1).bias  (SMEM)
    bs2 = sc_ref[1]                        # similarity Linear(64, 1).bias  (SMEM)

    # Attention branch, batch-on-lane result (64, TB); N = TB >= 128 per MXU push.
    h1 = jnp.maximum(
        lax.dot_general(wa1, e1, dn, precision=hi, preferred_element_type=f32) + ba1, 0.0)
    h2 = jnp.maximum(
        lax.dot_general(wa1, e2, dn, precision=hi, preferred_element_type=f32) + ba1, 0.0)
    # Linear(64, 1) head as a VPU multiply + sublane reduce (no N=1 MXU push).
    a1 = jax.nn.sigmoid(jnp.sum(h1 * wa2, axis=0, keepdims=True) + ba2)    # (1, TB)
    a2 = jax.nn.sigmoid(jnp.sum(h2 * wa2, axis=0, keepdims=True) + ba2)    # (1, TB)

    # Similarity head.  a1/a2 are per-pair scalars, so they commute through the
    # linear map:  Ws1[:, :D] @ (a1*e1) == a1 * (Ws1[:, :D] @ e1).
    # TODO(synk): at large D, fuse g1/g2 into one K=2D MXU push via a VMEM scratch.
    g1 = lax.dot_general(ws1a, e1, dn, precision=hi, preferred_element_type=f32)
    g2 = lax.dot_general(ws1b, e2, dn, precision=hi, preferred_element_type=f32)
    hs = jnp.maximum(g1 * a1 + g2 * a2 + bs1, 0.0)                         # (64, TB)
    # Final Linear(64, 1): VPU multiply + sublane reduce -> lane-dense (1, TB).
    sim = jnp.sum(hs * ws2, axis=0, keepdims=True) + bs2
    out_ref[0] = sim                       # unmasked full-lane-width store


def _round_up(x, m):
    return (x + m - 1) // m * m


def _choose_batch_tile(B, D, requested):
    # VMEM cap for the double-buffered stream: 2 inputs x 2 buffers x TB x D x 4 B,
    # kept well under the smallest scoped-VMEM default (v7x: 32 MiB / 64 MiB phys).
    budget = 16 * 1024 * 1024
    per_pair = 2 * 2 * D * 4
    cap = max(128, (budget // per_pair) // 128 * 128)
    tb = min(requested, cap)
    # Never tile wider than the (padded) batch...
    tb = min(tb, _round_up(B, 128))
    # ...and keep >= 2 grid steps when the batch allows it, so v7x's two
    # TensorCores both get work (no-op on single-core v5e/v6e).
    if B >= 256:
        tb = min(tb, _round_up((B + 1) // 2, 128))
    return max(tb, 128)


def init_params(key, embedding_dim):
    """Weights in PyTorch (out, in) layout, pre-packed into the kernel slabs."""
    D = embedding_dim
    ks = jax.random.split(key, 8)
    s = 0.1
    wa1_t = jax.random.normal(ks[0], (64, D), jnp.float32) * s     # attention Linear(D,64).weight
    ba1 = jax.random.normal(ks[1], (64,), jnp.float32) * s         # attention Linear(D,64).bias
    wa2 = jax.random.normal(ks[2], (64,), jnp.float32) * s         # attention Linear(64,1).weight
    ba2 = jax.random.normal(ks[3], (), jnp.float32) * s            # attention Linear(64,1).bias
    ws1_t = jax.random.normal(ks[4], (64, 2 * D), jnp.float32) * s  # similarity Linear(2D,64).weight
    bs1 = jax.random.normal(ks[5], (64,), jnp.float32) * s
    ws2 = jax.random.normal(ks[6], (64,), jnp.float32) * s         # similarity Linear(64,1).weight
    bs2 = jax.random.normal(ks[7], (), jnp.float32) * s

    # Kernel layout: one (192, D) weight slab + one (64, 4) column slab + two
    # SMEM scalars -> 3 constant-index-map inputs, DMA'd once and VMEM-resident.
    w_packed = jnp.concatenate([wa1_t, ws1_t[:, :D], ws1_t[:, D:]], axis=0)  # (192, D)
    wcols_packed = jnp.stack([ba1, wa2, bs1, ws2], axis=1)                    # (64, 4)
    scalars = jnp.stack([ba2, bs2])                                           # (2,)
    return dict(
        w_packed=w_packed, wcols_packed=wcols_packed, scalars=scalars,
        # unpacked copies, used only by the pure-JAX reference
        wa1_t=wa1_t, ba1=ba1, wa2=wa2, ba2=ba2,
        ws1_t=ws1_t, bs1=bs1, ws2=ws2, bs2=bs2,
    )


def gsmua_forward_batched(emb1, emb2, params, *, batch_tile=1024):
    """emb1, emb2: (B, D). Returns (B,) similarity scores, one per pair."""
    B, D = emb1.shape
    p = params
    TB = _choose_batch_tile(B, D, batch_tile)
    n_tiles = pl.cdiv(B, TB)
    Bp = n_tiles * TB
    pad = Bp - B

    # Only a pad (material only when B % TB != 0); the kernel consumes the
    # natural (TB, D) layout directly, so there is no other XLA prologue work.
    e1 = jnp.pad(emb1.astype(jnp.float32), ((0, pad), (0, 0)))
    e2 = jnp.pad(emb2.astype(jnp.float32), ((0, pad), (0, 0)))

    stream_bytes = 2 * 2 * TB * D * 4      # 2 inputs x double-buffer x block
    cost = pl.CostEstimate(
        flops=int(4 * 2 * 64 * D * Bp + 16 * 64 * Bp),
        transcendentals=int(2 * Bp),
        bytes_accessed=int(2 * Bp * D * 4 + Bp * 4 + (192 * D + 64 * 4 + 2) * 4),
    )
    const = lambda i: (0, 0)               # resident weights: same block every step

    out = pl.pallas_call(
        gsmua_kernel,
        out_shape=jax.ShapeDtypeStruct((n_tiles, 1, TB), jnp.float32),
        grid=(n_tiles,),
        in_specs=[
            pl.BlockSpec((TB, D), lambda i: (i, 0)),              # emb1 stream
            pl.BlockSpec((TB, D), lambda i: (i, 0)),              # emb2 stream
            pl.BlockSpec((192, D), const),                        # packed (64,D) weights
            pl.BlockSpec((64, 4), const),                         # packed bias / head columns
            pl.BlockSpec(memory_space=pltpu.MemorySpace.SMEM),    # [ba2, bs2]
        ],
        out_specs=pl.BlockSpec((1, 1, TB), lambda i: (i, 0, 0)),
        compiler_params=pltpu.CompilerParams(
            dimension_semantics=("parallel",),
            vmem_limit_bytes=min(32 << 20, max(16 << 20, stream_bytes + (8 << 20))),
        ),
        cost_estimate=cost,
    )(e1, e2, p["w_packed"], p["wcols_packed"], p["scalars"])
    return out.reshape(Bp)[:B]


def gsmua_forward(emb1, emb2, params):
    """Single 1-D pair, matching the PyTorch module's output shape (1,)."""
    return gsmua_forward_batched(emb1[None, :], emb2[None, :], params)


def gsmua_reference(emb1, emb2, p):
    """Pure-JAX per-pair reference mirroring the PyTorch forward exactly."""
    hi = lax.Precision.HIGHEST

    def attention(x):
        h = jnp.maximum(jnp.dot(p["wa1_t"], x, precision=hi) + p["ba1"], 0.0)
        return jax.nn.sigmoid(jnp.dot(p["wa2"], h, precision=hi) + p["ba2"])

    a1 = attention(emb1)
    a2 = attention(emb2)
    concat = jnp.concatenate([a1 * emb1, a2 * emb2], axis=0)        # cat(dim=0), (2D,)
    h = jnp.maximum(jnp.dot(p["ws1_t"], concat, precision=hi) + p["bs1"], 0.0)
    return jnp.dot(p["ws2"], h, precision=hi) + p["bs2"]


if __name__ == "__main__":
    embedding_dim = 32
    batch = 256                             # -> 2 grid tiles of 128 pairs each
    key = jax.random.PRNGKey(0)
    k_params, k_e1, k_e2 = jax.random.split(key, 3)

    params = init_params(k_params, embedding_dim)
    emb1 = jax.random.normal(k_e1, (batch, embedding_dim), jnp.float32)
    emb2 = jax.random.normal(k_e2, (batch, embedding_dim), jnp.float32)

    sim = jax.block_until_ready(gsmua_forward_batched(emb1, emb2, params))
    ref = jax.block_until_ready(
        jax.vmap(lambda a, b: gsmua_reference(a, b, params))(emb1, emb2))

    assert sim.shape == (batch,)
    assert jnp.allclose(sim, ref, atol=1e-4, rtol=1e-4), (sim[:4], ref[:4])

    # Original module semantics: single 1-D pair -> (1,). Also exercises padding.
    single = jax.block_until_ready(gsmua_forward(emb1[0], emb2[0], params))
    assert single.shape == (1,)
    assert jnp.allclose(single[0], ref[0], atol=1e-4, rtol=1e-4), (single, ref[0])

    print("KERNEL_OK")
</pallas_src>

<mosaic_0001>
module attributes {stable_mosaic.version = 11 : i64} {
  func.func @gsmua_kernel(%arg0: i32, %arg1: memref<128x32xf32, #tpu.memory_space<vmem>>, %arg2: memref<128x32xf32, #tpu.memory_space<vmem>>, %arg3: memref<192x32xf32, #tpu.memory_space<vmem>>, %arg4: memref<64x4xf32, #tpu.memory_space<vmem>>, %arg5: memref<2xf32, #tpu.memory_space<smem>>, %arg6: memref<1x1x128xf32, #tpu.memory_space<vmem>>) attributes {dimension_semantics = [#tpu.dimension_semantics<parallel>], iteration_bounds = array<i64: 2>, scalar_prefetch = 0 : i64, scratch_operands = 0 : i64, tpu.core_type = #tpu.core_type<tc>, window_params = [{transform_indices = @transform_0, window_bounds = array<i64: 128, 32>}, {transform_indices = @transform_1, window_bounds = array<i64: 128, 32>}, {pipeline_mode = #tpu.pipeline_mode<synchronous>, transform_indices = @transform_2, window_bounds = array<i64: 192, 32>}, {pipeline_mode = #tpu.pipeline_mode<synchronous>, transform_indices = @transform_3, window_bounds = array<i64: 64, 4>}, {transform_indices = @transform_4, window_bounds = array<i64: 2>}, {transform_indices = @transform_5, window_bounds = array<i64: 1, 1, 128>}]} {
    %c0 = arith.constant 0 : index
    %c0_0 = arith.constant 0 : index
    %0 = vector.load %arg1[%c0, %c0_0] : memref<128x32xf32, #tpu.memory_space<vmem>>, vector<128x32xf32>
    %c0_1 = arith.constant 0 : index
    %c0_2 = arith.constant 0 : index
    %1 = vector.load %arg2[%c0_1, %c0_2] : memref<128x32xf32, #tpu.memory_space<vmem>>, vector<128x32xf32>
    %c0_3 = arith.constant 0 : index
    %c0_4 = arith.constant 0 : index
    %2 = vector.load %arg3[%c0_3, %c0_4] : memref<192x32xf32, #tpu.memory_space<vmem>>, vector<192x32xf32>
    %3 = vector.extract_strided_slice %2 {offsets = [0, 0], sizes = [64, 32], strides = [1, 1]} : vector<192x32xf32> to vector<64x32xf32>
    %4 = vector.extract_strided_slice %2 {offsets = [64, 0], sizes = [64, 32], strides = [1, 1]} : vector<192x32xf32> to vector<64x32xf32>
    %5 = vector.extract_strided_slice %2 {offsets = [128, 0], sizes = [64, 32], strides = [1, 1]} : vector<192x32xf32> to vector<64x32xf32>
    %c0_5 = arith.constant 0 : index
    %c0_6 = arith.constant 0 : index
    %6 = vector.load %arg4[%c0_5, %c0_6] : memref<64x4xf32, #tpu.memory_space<vmem>>, vector<64x4xf32>
    %7 = vector.extract_strided_slice %6 {offsets = [0, 0], sizes = [64, 1], strides = [1, 1]} : vector<64x4xf32> to vector<64x1xf32>
    %8 = vector.extract_strided_slice %6 {offsets = [0, 1], sizes = [64, 1], strides = [1, 1]} : vector<64x4xf32> to vector<64x1xf32>
    %9 = vector.extract_strided_slice %6 {offsets = [0, 2], sizes = [64, 1], strides = [1, 1]} : vector<64x4xf32> to vector<64x1xf32>
    %10 = vector.extract_strided_slice %6 {offsets = [0, 3], sizes = [64, 1], strides = [1, 1]} : vector<64x4xf32> to vector<64x1xf32>
    %c0_7 = arith.constant 0 : index
    %11 = memref.load %arg5[%c0_7] : memref<2xf32, #tpu.memory_space<smem>>
    %c1 = arith.constant 1 : index
    %12 = memref.load %arg5[%c1] : memref<2xf32, #tpu.memory_space<smem>>
    %cst = arith.constant dense<0.000000e+00> : vector<64x128xf32>
    %13 = tpu.matmul %3, %0, %cst {dimension_numbers = #tpu.dot_dimension_numbers<[1], [1], [0], [0], [0, 0, 1, 0], [], []>, precision = #tpu.contract_precision<fp32>} : vector<64x32xf32>, vector<128x32xf32>, vector<64x128xf32> -> vector<64x128xf32>
    %14 = vector.broadcast %7 : vector<64x1xf32> to vector<64x128xf32>
    %15 = arith.addf %13, %14 : vector<64x128xf32>
    %cst_8 = arith.constant 0.000000e+00 : f32
    %16 = vector.broadcast %cst_8 : f32 to vector<64x128xf32>
    %17 = arith.maximumf %15, %16 : vector<64x128xf32>
    %cst_9 = arith.constant dense<0.000000e+00> : vector<64x128xf32>
    %18 = tpu.matmul %3, %1, %cst_9 {dimension_numbers = #tpu.dot_dimension_numbers<[1], [1], [0], [0], [0, 0, 1, 0], [], []>, precision = #tpu.contract_precision<fp32>} : vector<64x32xf32>, vector<128x32xf32>, vector<64x128xf32> -> vector<64x128xf32>
    %19 = vector.broadcast %7 : vector<64x1xf32> to vector<64x128xf32>
    %20 = arith.addf %18, %19 : vector<64x128xf32>
    %cst_10 = arith.constant 0.000000e+00 : f32
    %21 = vector.broadcast %cst_10 : f32 to vector<64x128xf32>
    %22 = arith.maximumf %20, %21 : vector<64x128xf32>
    %23 = vector.broadcast %8 : vector<64x1xf32> to vector<64x128xf32>
    %24 = arith.mulf %17, %23 : vector<64x128xf32>
    %cst_11 = arith.constant dense<0.000000e+00> : vector<128xf32>
    %25 = vector.multi_reduction <add>, %24, %cst_11 [0] : vector<64x128xf32> to vector<128xf32>
    %26 = vector.shape_cast %25 : vector<128xf32> to vector<1x128xf32>
    %27 = vector.broadcast %11 : f32 to vector<1x128xf32>
    %28 = arith.addf %26, %27 : vector<1x128xf32>
    %29 = arith.negf %28 : vector<1x128xf32>
    %30 = math.exp %29 : vector<1x128xf32>
    %cst_12 = arith.constant 1.000000e+00 : f32
    %31 = vector.broadcast %cst_12 : f32 to vector<1x128xf32>
    %32 = arith.addf %31, %30 : vector<1x128xf32>
    %33 = arith.divf %31, %32 : vector<1x128xf32>
    %34 = vector.broadcast %8 : vector<64x1xf32> to vector<64x128xf32>
    %35 = arith.mulf %22, %34 : vector<64x128xf32>
    %cst_13 = arith.constant dense<0.000000e+00> : vector<128xf32>
    %36 = vector.multi_reduction <add>, %35, %cst_13 [0] : vector<64x128xf32> to vector<128xf32>
    %37 = vector.shape_cast %36 : vector<128xf32> to vector<1x128xf32>
    %38 = vector.broadcast %11 : f32 to vector<1x128xf32>
    %39 = arith.addf %37, %38 : vector<1x128xf32>
    %40 = arith.negf %39 : vector<1x128xf32>
    %41 = math.exp %40 : vector<1x128xf32>
    %cst_14 = arith.constant 1.000000e+00 : f32
    %42 = vector.broadcast %cst_14 : f32 to vector<1x128xf32>
    %43 = arith.addf %42, %41 : vector<1x128xf32>
    %44 = arith.divf %42, %43 : vector<1x128xf32>
    %cst_15 = arith.constant dense<0.000000e+00> : vector<64x128xf32>
    %45 = tpu.matmul %4, %0, %cst_15 {dimension_numbers = #tpu.dot_dimension_numbers<[1], [1], [0], [0], [0, 0, 1, 0], [], []>, precision = #tpu.contract_precision<fp32>} : vector<64x32xf32>, vector<128x32xf32>, vector<64x128xf32> -> vector<64x128xf32>
    %cst_16 = arith.constant dense<0.000000e+00> : vector<64x128xf32>
    %46 = tpu.matmul %5, %1, %cst_16 {dimension_numbers = #tpu.dot_dimension_numbers<[1], [1], [0], [0], [0, 0, 1, 0], [], []>, precision = #tpu.contract_precision<fp32>} : vector<64x32xf32>, vector<128x32xf32>, vector<64x128xf32> -> vector<64x128xf32>
    %47 = vector.broadcast %33 : vector<1x128xf32> to vector<64x128xf32>
    %48 = arith.mulf %45, %47 : vector<64x128xf32>
    %49 = vector.broadcast %44 : vector<1x128xf32> to vector<64x128xf32>
    %50 = arith.mulf %46, %49 : vector<64x128xf32>
    %51 = arith.addf %48, %50 : vector<64x128xf32>
    %52 = vector.broadcast %9 : vector<64x1xf32> to vector<64x128xf32>
    %53 = arith.addf %51, %52 : vector<64x128xf32>
    %cst_17 = arith.constant 0.000000e+00 : f32
    %54 = vector.broadcast %cst_17 : f32 to vector<64x128xf32>
    %55 = arith.maximumf %53, %54 : vector<64x128xf32>
    %56 = vector.broadcast %10 : vector<64x1xf32> to vector<64x128xf32>
    %57 = arith.mulf %55, %56 : vector<64x128xf32>
    %cst_18 = arith.constant dense<0.000000e+00> : vector<128xf32>
    %58 = vector.multi_reduction <add>, %57, %cst_18 [0] : vector<64x128xf32> to vector<128xf32>
    %59 = vector.shape_cast %58 : vector<128xf32> to vector<1x128xf32>
    %60 = vector.broadcast %12 : f32 to vector<1x128xf32>
    %61 = arith.addf %59, %60 : vector<1x128xf32>
    %c0_19 = arith.constant 0 : index
    %c0_20 = arith.constant 0 : index
    %c0_21 = arith.constant 0 : index
    %62 = vector.load %arg6[%c0_19, %c0_20, %c0_21] : memref<1x1x128xf32, #tpu.memory_space<vmem>>, vector<1x1x128xf32>
    %63 = vector.shape_cast %62 : vector<1x1x128xf32> to vector<1x128xf32>
    %64 = vector.shape_cast %61 : vector<1x128xf32> to vector<1x1x128xf32>
    tpu.vector_store %arg6[%c0_19, %c0_20, %c0_21], %64 {strides = array<i32>} : memref<1x1x128xf32, #tpu.memory_space<vmem>>, vector<1x1x128xf32>,
    return
  }
  func.func @transform_0(%arg0: i32) -> (i32, i32) {
    %c0_i32 = arith.constant 0 : i32
    %c0_i32_0 = arith.constant 0 : i32
    return %arg0, %c0_i32 : i32, i32
  }
  func.func @transform_1(%arg0: i32) -> (i32, i32) {
    %c0_i32 = arith.constant 0 : i32
    %c0_i32_0 = arith.constant 0 : i32
    return %arg0, %c0_i32 : i32, i32
  }
  func.func @transform_2(%arg0: i32) -> (i32, i32) {
    %c0_i32 = arith.constant 0 : i32
    %c0_i32_0 = arith.constant 0 : i32
    %c0_i32_1 = arith.constant 0 : i32
    return %c0_i32, %c0_i32_0 : i32, i32
  }
  func.func @transform_3(%arg0: i32) -> (i32, i32) {
    %c0_i32 = arith.constant 0 : i32
    %c0_i32_0 = arith.constant 0 : i32
    %c0_i32_1 = arith.constant 0 : i32
    return %c0_i32, %c0_i32_0 : i32, i32
  }
  func.func @transform_4(%arg0: i32) -> i32 {
    %c0_i32 = arith.constant 0 : i32
    %c0_i32_0 = arith.constant 0 : i32
    return %c0_i32 : i32
  }
  func.func @transform_5(%arg0: i32) -> (i32, i32, i32) {
    %c0_i32 = arith.constant 0 : i32
    %c0_i32_0 = arith.constant 0 : i32
    %c0_i32_1 = arith.constant 0 : i32
    return %arg0, %c0_i32, %c0_i32_0 : i32, i32, i32
  }
}

</mosaic_0001>

<bundles_post_ra>
// kernel: tpu_custom_call.1
= control target key start
LH: loop header
LB: loop body
LE: loop exit
PB: predicated region body
PF: predicated region fallthrough
CT: control target
= control target key end

     0   :  { %10 = vsyncpa [#allocation4], 0  ;;  %s9253_s0 = inlined_call_operand.vmem [shape: f32[256,32], index: 0, kind: input, shape index: {}]   ;;  %s9254_s1 = inlined_call_operand.vmem [shape: f32[256,32], index: 1, kind: input, shape index: {}]   ;;  %s9255_s2 = inlined_call_operand.vmem [shape: f32[192,32], index: 2, kind: input, shape index: {}]   ;;  %s9256_s3 = inlined_call_operand.vmem [shape: f32[64,4], index: 3, kind: input, shape index: {}]   ;;  %s9257_s4 = inlined_call_operand.vmem [shape: f32[2], index: 4, kind: input, shape index: {}]   ;;  %s9258_s5 = inlined_call_operand.hbm [shape: f32[2,1,128], index: 5, kind: output, shape index: {}]  }
   0x1   :  { %11 = vsyncpa [#allocation3], 0 }
   0x2   :  { %13 = vsyncpa [#allocation3 + $0x1], 0  ;;  %s7413_s18 = smov 0   ;;  %s7415_s19 = smov 0  }
   0x3   :  { %s7417_s20 = smov 0   ;;  %s7419_s21 = smov 0  }
   0x4 LB: > { %s7434_s22 = sadd.s32 4294967295, %s7375_s21   ;;  %s4628_s23 = sadd.s32 4294967294, %s7375_s21   ;;  %s7375_s21 = sphi %s7419_s21, %s9846_s21   ;;  %s7371_s20 = sphi %s7417_s20, %s9845_s20   ;;  %s7367_s19 = sphi %s7415_s19, %s9844_s19   ;;  %s7363_s18 = sphi %s7413_s18, %s9843_s18  }
   0x5   : > { %s7438_s24 = sadd.s32 1, %s7375_s21   ;;  %s141_s25 = sadd.s32 1, %s7371_s20 }
   0x6   : > { %s138_s26 = ssub.s32 %s7375_s21, %s7438_s24  ;;  %p151_p0 = scmp.ne.s32.totalorder %s7371_s20, %s7367_s19 }
   0x7   : > { %p139_p1 = scmp.eq.s32.totalorder %s138_s26, 0  ;;  %p152_p2 = scmp.eq.s32.totalorder %s7434_s22, 1 }
   0x8   : > { %p157_p3 = scmp.ne.s32.totalorder %s7367_s19, %s7363_s18  ;;  %p158_p4 = scmp.eq.s32.totalorder %s4628_s23, 1 }
   0x9   : > { %s7449_s27 = scalar_select %p139_p1, %s7371_s20, %s141_s25  }
   0xa   : > { %p7451_p5 = por %p152_p2, %p151_p0  ;;  %p7455_p6 = por %p158_p4, %p157_p3 }
   0xb   : > { %p4629_p7 = scmp.ge.s32.totalorder %s7375_s21, 1  ;;  %p165_p8 = scmp.lt.s32.totalorder %s7375_s21, 3 }
   0xc   : > { %p7234_p9 = scmp.eq.s32.totalorder %s7434_s22, 0  ;;  %s184_s8 = sshll.u32 %s9257_s4, 4  ;;  %s185_s8 = int_to_ptr.vmem [resolvable:$true] %s184_s8 }
   0xd   : > { %p7462_p10 = pnand %p4629_p7, %p165_p8  ;;  %s7294_s9 = scalar_lea.vmem %s185_s8, 16 }
   0xe   : > { %p7295_p13 = scmp.ne.s32.totalorder %s185_s8, %s7294_s9  ;;  %p7302_p3 = scmp.lt.s32.totalorder %s185_s8, %s185_s8 }
   0xf   : > { %p7226_p11 = pneg %p7462_p10  ;;  %p7303_p4 = scmp.lt.s32.totalorder %s7294_s9, %s7294_s9 }
  0x11   : > { %p7227_p12 = pnand %p7234_p9, %p7226_p11  ;;  %p7304_p7 = por %p7303_p4, %p7302_p3 }
  0x13   : > { %p7296_p0 = pneg %p7227_p12 }
  0x15   : > { %p7297_p1 = pnand %p7296_p0, %p7295_p13 }
  0x17   : > { %p7298_p2 = pneg %p7297_p1 }
  0x19   : > { %p7305_p8 = pnand %p7304_p7, %p7298_p2 }
  0x1b   : > { %7308 = shalt.err (!%p7305_p8)
}
  0x1c   : > { %s7377_s10 = smov [#allocation2]   ;;  %215 = sbr.rel (%p7462_p10) target bundleno = 1087 (0x43f), region = 40 }
  0x1d   : > { %7229 = dma.vmem_to_smem (!%p7227_p12), %s185_s8, 16, %s7377_s10, [#allocation4]  }
  0x23   : > { %7354 = dma.done.wait (%p7234_p9), [#allocation4], 16  }
  0x24   : > { %7356 = vsyncadd (%p7234_p9), [#allocation4], 4294967280 }
  0x25   : > { %221 = sfence }
  0x26   : > { %s7480_s11 = sshll.u32 %s7434_s22, 4  ;;  %v292_v0 = vld [vmem:[%s9255_s2] sm:$0xff]  ;;  %vm366_vm0 = vcmask 261120   ;;  %s246_s30 = sand.u32 1, %s7367_s19  }
  0x27   : > { %p249_p11 = scmp.lt.s32.totalorder %s7480_s11, 31  ;;  %v368_v1 = vsel %vm366_vm0, %v292_v0, 0  ;;  %s247_s6 = scalar_lea.vmem [#allocation5], %s246_s30 }
  0x28   : > { %v7501_v5 = vand.u32 4294901760, %v368_v1  ;;  %s4549_s7 = sshll.u32 %s247_s6, 4  ;;  %s9211_s10 = scalar_lea.hbm %s9258_s5, %s7480_s11  ;;  %s9213_s7 = int_to_ptr.vmem [resolvable:$true] %s4549_s7 }
  0x29   : > { %s250_s14 = scalar_select %p249_p11, %s7480_s11, 31 }
  0x2a   : > { %9518 = vst [vmem:[#allocation8_spill] sm:$0xff] %v7501_v5  ;;  %v7588_v41 = vsub.f32 %v368_v1, %v7501_v5  ;;  %s4537_s12 = scalar_lea.sflag [#allocation3], %s246_s30  ;;  %s7309_s13 = scalar_lea.vmem %s9213_s7, 16 }
  0x2b   : > { %s4635_s15 = sshll.u32 %s250_s14, 3  ;;  %p7310_p9 = scmp.ne.s32.totalorder %s9213_s7, %s7309_s13 }
  0x2c   : > { %s7491_s23 = scalar_lea.vmem %s9253_s0, %s4635_s15  ;;  %s7496_s26 = scalar_lea.vmem %s9254_s1, %s4635_s15  ;;  %9523 = vst [vmem:[#allocation13_spill] sm:$0xff] %v7588_v41  ;;  %v7604_v49 = vand.u32 4294901760, %v7588_v41 }
  0x2d   : > { %v260_v2 = vld [vmem:[%s7491_s23] sm:$0xff]  ;;  %v261_v3 = vld [vmem:[%s7491_s23 + $0x8] sm:$0xff]  ;;  %v262_v10 = vld [vmem:[%s7491_s23 + $0x10] sm:$0xff]  ;;  %p7311_p10 = pnand %p7310_p9, %p7451_p5  ;;  %s7382_s14 = smov [#allocation5]  }
  0x2e   : > { %v276_v4 = vld [vmem:[%s7496_s26] sm:$0xff]  ;;  %v7504_v6 = vsel %vm366_vm0, %v260_v2, 0  ;;  %v7507_v7 = vsel %vm366_vm0, %v261_v3, 0  ;;  %v277_v8 = vld [vmem:[%s7496_s26 + $0x8] sm:$0xff]  ;;  %v263_v11 = vld [vmem:[%s7491_s23 + $0x18] sm:$0xff]  ;;  %v7525_v19 = vsel %vm366_vm0, %v262_v10, 0  ;;  %v523_v57 = vsub.f32 %v7588_v41, %v7604_v49 }
  0x2f   : > { %v7511_v9 = vsel %vm366_vm0, %v276_v4, 0  ;;  %v440_v12 = vand.u32 4294901760, %v7504_v6  ;;  %v443_v13 = vand.u32 4294901760, %v7507_v7  ;;  %v7518_v14 = vsel %vm366_vm0, %v277_v8, 0  ;;  %v278_v16 = vld [vmem:[%s7496_s26 + $0x10] sm:$0xff]  ;;  %v279_v17 = vld [vmem:[%s7496_s26 + $0x18] sm:$0xff]  ;;  %p7312_p12 = pneg %p7311_p10 }
  0x30   : > { %v1438_v15 = vand.u32 4294901760, %v7511_v9  ;;  %v1441_v18 = vand.u32 4294901760, %v7518_v14  ;;  %v7528_v20 = vsel %vm366_vm0, %v263_v11, 0  ;;  %v7531_v21 = vsel %vm366_vm0, %v278_v16, 0  ;;  %v264_v22 = vld [vmem:[%s7491_s23 + $0x20] sm:$0xff]  ;;  %v265_v23 = vld [vmem:[%s7491_s23 + $0x28] sm:$0xff] }
  0x31   : > { %v7539_v24 = vpack.c.bf16 %v443_v13, %v440_v12  ;;  %v9274_v25 = vand.u32 4294901760, %v7525_v19  ;;  %v9273_v26 = vand.u32 4294901760, %v7528_v20  ;;  %v7544_v27 = vsel %vm366_vm0, %v279_v17, 0  ;;  %v280_v28 = vld [vmem:[%s7496_s26 + $0x20] sm:$0xff]  ;;  %v281_v29 = vld [vmem:[%s7496_s26 + $0x28] sm:$0xff]  ;;  %v266_v44 = vld [vmem:[%s7491_s23 + $0x30] sm:$0xff] }
  0x32   : > { %v7552_v30 = vpack.c.bf16 %v1441_v18, %v1438_v15  ;;  %v9272_v31 = vand.u32 4294901760, %v7531_v21  ;;  %v9271_v32 = vand.u32 4294901760, %v7544_v27  ;;  %v7557_v33 = vsel %vm366_vm0, %v264_v22, 0  ;;  %v267_v45 = vld [vmem:[%s7491_s23 + $0x38] sm:$0xff]  ;;  %v282_v46 = vld [vmem:[%s7496_s26 + $0x30] sm:$0xff]  ;;  %9525 = vst [vmem:[#allocation15_spill] sm:$0xff] %v7604_v49 }
  0x33   : > { %9519 = vst [vmem:[#allocation9_spill] sm:$0xff] %v7539_v24  ;;  %6277 = vmatprep.subr.bf16.mxu0 %v7539_v24  ;;  %v7564_v34 = vpack.c.bf16 %v9273_v26, %v9274_v25  ;;  %v7567_v35 = vsel %vm366_vm0, %v265_v23, 0  ;;  %v7570_v36 = vsel %vm366_vm0, %v280_v28, 0  ;;  %v7581_v38 = vsel %vm366_vm0, %v281_v29, 0  ;;  %v283_v47 = vld [vmem:[%s7496_s26 + $0x38] sm:$0xff]  ;;  %v268_v60 = vld [vmem:[%s7491_s23 + $0x40] sm:$0xff] }
  0x34   : > { %9520 = vst [vmem:[#allocation10_spill] sm:$0xff] %v7552_v30  ;;  %6469 = vmatprep.subr.bf16.mxu1 %v7552_v30  ;;  %6279 = vmatpush3.bf16.xpose.msra.mxu0 %v7539_v24  ;;  %v7578_v37 = vpack.c.bf16 %v9271_v32, %v9272_v31  ;;  %v9270_v39 = vand.u32 4294901760, %v7557_v33  ;;  %v9269_v40 = vand.u32 4294901760, %v7567_v35  ;;  %v9268_v42 = vand.u32 4294901760, %v7570_v36  ;;  %v269_v61 = vld [vmem:[%s7491_s23 + $0x48] sm:$0xff]  ;;  %v284_v62 = vld [vmem:[%s7496_s26 + $0x40] sm:$0xff] }
  0x35   : > { %9521 = vst [vmem:[#allocation11_spill] sm:$0xff] %v7564_v34  ;;  %6471 = vmatpush3.bf16.xpose.msra.mxu1 %v7552_v30  ;;  %6281 = vmatprep.subr.bf16.mxu0 %v7564_v34  ;;  %v9267_v43 = vand.u32 4294901760, %v7581_v38  ;;  %v7613_v51 = vsel %vm366_vm0, %v266_v44, 0  ;;  %v7616_v52 = vsel %vm366_vm0, %v267_v45, 0  ;;  %v7619_v53 = vsel %vm366_vm0, %v282_v46, 0  ;;  %v285_v63 = vld [vmem:[%s7496_s26 + $0x48] sm:$0xff] }
  0x36   : > { %9522 = vst [vmem:[#allocation12_spill] sm:$0xff] %v7578_v37  ;;  %6473 = vmatprep.subr.bf16.mxu1 %v7578_v37  ;;  %v7601_v48 = vpack.c.bf16 %v9269_v40, %v9270_v39  ;;  %v7622_v54 = vsel %vm366_vm0, %v283_v47, 0  ;;  %v9266_v55 = vand.u32 4294901760, %v7613_v51  ;;  %v9265_v56 = vand.u32 4294901760, %v7616_v52  ;;  %v270_v23 = vld [vmem:[%s7491_s23 + $0x50] sm:$0xff]  ;;  %v271_v28 = vld [vmem:[%s7491_s23 + $0x58] sm:$0xff] }
  0x37   : > { %v7610_v50 = vpack.c.bf16 %v9267_v43, %v9268_v42  ;;  %v9264_v58 = vand.u32 4294901760, %v7619_v53  ;;  %v9263_v59 = vand.u32 4294901760, %v7622_v54  ;;  %v524_v1 = vand.u32 4294901760, %v523_v57  ;;  %v286_v29 = vld [vmem:[%s7496_s26 + $0x50] sm:$0xff]  ;;  %v287_v44 = vld [vmem:[%s7496_s26 + $0x58] sm:$0xff]  ;;  %v293_v46 = vld [vmem:[%s9255_s2 + $0x8] sm:$0xff] }
  0x38   : > { %9524 = vst [vmem:[#allocation14_spill] sm:$0xff] %v7601_v48  ;;  %v7642_v0 = vpack.c.bf16 %v9265_v56, %v9266_v55  ;;  %v7651_v3 = vsel %vm366_vm0, %v268_v60, 0  ;;  %v7654_v4 = vsel %vm366_vm0, %v269_v61, 0  ;;  %v7657_v8 = vsel %vm366_vm0, %v284_v62, 0  ;;  %v294_v61 = vld [vmem:[%s9255_s2 + $0x10] sm:$0xff]  ;;  %v295_v62 = vld [vmem:[%s9255_s2 + $0x18] sm:$0xff] }
  0x39   : > { %9526 = vst [vmem:[#allocation16_spill] sm:$0xff] %v7610_v50  ;;  %v7648_v2 = vpack.c.bf16 %v9263_v59, %v9264_v58  ;;  %v7660_v10 = vsel %vm366_vm0, %v285_v63, 0  ;;  %5252 = vmatprep.mubr.f32.mxu0 %v524_v1  ;;  %5516 = vmatprep.mubr.f32.mxu1 %v524_v1  ;;  %v9262_v11 = vand.u32 4294901760, %v7651_v3  ;;  %v9261_v16 = vand.u32 4294901760, %v7654_v4  ;;  %v297_v59 = vld [vmem:[%s9255_s2 + $0x28] sm:$0xff]  ;;  %v288_v58 = vld [vmem:[%s7496_s26 + $0x60] sm:$0xff] }
  0x3a   : > { %9527 = vst [vmem:[#allocation17_spill] sm:$0xff] %v7642_v0  ;;  %v9260_v17 = vand.u32 4294901760, %v7657_v8  ;;  %v9259_v22 = vand.u32 4294901760, %v7660_v10  ;;  %v7690_v57 = vsel %vm366_vm0, %v270_v23, 0  ;;  %v7693_v60 = vsel %vm366_vm0, %v271_v28, 0  ;;  %v289_v56 = vld [vmem:[%s7496_s26 + $0x68] sm:$0xff] }
  0x3b   : > { %9528 = vst [vmem:[#allocation18_spill] sm:$0xff] %v7648_v2  ;;  %v7678_v45 = vpack.c.bf16 %v9261_v16, %v9262_v11  ;;  %v7702_v63 = vsel %vm366_vm0, %v286_v29, 0  ;;  %v7705_v1 = vsel %vm366_vm0, %v287_v44, 0  ;;  %v371_v23 = vsel %vm366_vm0, %v293_v46, 0  ;;  %v272_v11 = vld [vmem:[%s7491_s23 + $0x60] sm:$0xff]  ;;  %s7313_s15 = sshll.u32 %s7382_s14, 4  ;;  %s7314_s15 = int_to_ptr.vmem [resolvable:$false] %s7313_s15 }
  0x3c   : > { %6283 = vmatpush3.bf16.xpose.msra.mxu0 %v7564_v34  ;;  %v7687_v47 = vpack.c.bf16 %v9259_v22, %v9260_v17  ;;  %v9278_v28 = vand.u32 4294901760, %v7690_v57  ;;  %v9275_v22 = vand.u32 4294901760, %v7693_v60  ;;  %v374_v29 = vsel %vm366_vm0, %v294_v61, 0  ;;  %v296_v17 = vld [vmem:[%s9255_s2 + $0x20] sm:$0xff]  ;;  %v298_v61 = vld [vmem:[%s9255_s2 + $0x30] sm:$0xff]  ;;  %s7315_s16 = scalar_lea.vmem %s7314_s15, 32  ;;  %p7316_p13 = scmp.lt.s32.totalorder %s9213_s7, %s7314_s15 }
  0x3d   : > { %6475 = vmatpush3.bf16.xpose.msra.mxu1 %v7578_v37  ;;  %6285 = vmatprep.subr.bf16.mxu0 %v7601_v48  ;;  %9529 = vst [vmem:[#allocation19_spill] sm:$0xff] %v7678_v45  ;;  %v377_v44 = vsel %vm366_vm0, %v295_v62, 0  ;;  %v9277_v46 = vand.u32 4294901760, %v7702_v63  ;;  %v9276_v16 = vand.u32 4294901760, %v7705_v1  ;;  %v273_v62 = vld [vmem:[%s7491_s23 + $0x68] sm:$0xff]  ;;  %v7731_v55 = vand.u32 4294901760, %v371_v23  ;;  %p7317_p0 = scmp.lt.s32.totalorder %s7315_s16, %s7309_s13 }
  0x3e   : > { %6477 = vmatprep.subr.bf16.mxu1 %v7610_v50  ;;  %9530 = vst [vmem:[#allocation20_spill] sm:$0xff] %v7687_v47  ;;  %v7733_v43 = vand.u32 4294901760, %v374_v29  ;;  %v7735_v42 = vand.u32 4294901760, %v377_v44  ;;  %v380_v40 = vsel %vm366_vm0, %v296_v17, 0  ;;  %v7742_v39 = vpack.c.bf16 %v9275_v22, %v9278_v28  ;;  %v290_v28 = vld [vmem:[%s7496_s26 + $0x70] sm:$0xff] }
  0x3f   : > { %9531 = vst [vmem:[#allocation21_spill] sm:$0xff] %v7731_v55  ;;  %v7745_v32 = vsel %vm366_vm0, %v272_v11, 0  ;;  %v7748_v31 = vsel %vm366_vm0, %v297_v59, 0  ;;  %v7751_v26 = vsel %vm366_vm0, %v298_v61, 0  ;;  %v7757_v17 = vpack.c.bf16 %v9276_v16, %v9277_v46  ;;  %v275_v16 = vld [vmem:[%s7491_s23 + $0x78] sm:$0xff]  ;;  %p7318_p1 = por %p7317_p0, %p7316_p13 }
  0x40   : > { %9532 = vst [vmem:[#allocation22_spill] sm:$0xff] %v7733_v43  ;;  %9533 = vst [vmem:[#allocation23_spill] sm:$0xff] %v7735_v42  ;;  %v7760_v25 = vsel %vm366_vm0, %v273_v62, 0  ;;  %v7763_v22 = vsel %vm366_vm0, %v288_v58, 0  ;;  %v7768_v59 = vsub.f32 %v7504_v6, %v440_v12  ;;  %v7771_v11 = vsel %vm366_vm0, %v289_v56, 0 }
  0x41   : > { %9534 = vst [vmem:[#allocation24_spill] sm:$0xff] %v7742_v39  ;;  %9535 = vst [vmem:[#allocation25_spill] sm:$0xff] %v7757_v17  ;;  %v7776_v61 = vsub.f32 %v7507_v7, %v443_v13  ;;  %v7781_v62 = vsub.f32 %v7511_v9, %v1438_v15  ;;  %v7786_v58 = vsub.f32 %v7518_v14, %v1441_v18  ;;  %v7795_v12 = vand.u32 4294901760, %v380_v40  ;;  %v299_v18 = vld [vmem:[%s9255_s2 + $0x38] sm:$0xff]  ;;  %p7319_p2 = pnand %p7318_p1, %p7312_p12 }
  0x42   : > { %9536 = vst [vmem:[#allocation26_spill] sm:$0xff] %v7768_v59  ;;  %v7790_v6 = vsub.f32 %v371_v23, %v7731_v55  ;;  %v7793_v7 = vsub.f32 %v374_v29, %v7733_v43  ;;  %v7802_v14 = vsub.f32 %v377_v44, %v7735_v42  ;;  %v7805_v15 = vand.u32 4294901760, %v7748_v31  ;;  %v274_v29 = vld [vmem:[%s7491_s23 + $0x70] sm:$0xff]  ;;  %v291_v13 = vld [vmem:[%s7496_s26 + $0x78] sm:$0xff]  ;;  %s324_s23 = sld [smem:[#allocation2]]  ;;  %s4638_s26 = sld [smem:[#allocation2 + $0x1]] }
  0x43   : > { %9537 = vst [vmem:[#allocation27_spill] sm:$0xff] %v7776_v61  ;;  %9538 = vst [vmem:[#allocation28_spill] sm:$0xff] %v7781_v62  ;;  %v7817_v44 = vand.u32 4294901760, %v7751_v26  ;;  %v9549_v46 = vand.u32 4294901760, %v7528_v20  ;;  %v9551_v49 = vand.u32 4294901760, %v7531_v21  ;;  %v9564_v37 = vand.u32 4294901760, %v7776_v61 }
  0x44   : > { %6287 = vmatpush3.bf16.xpose.msra.mxu0 %v7601_v48  ;;  %9539 = vst [vmem:[#allocation29_spill] sm:$0xff] %v7786_v58  ;;  %9540 = vst [vmem:[#allocation30_spill] sm:$0xff] %v7790_v6  ;;  %v7830_v23 = vand.u32 4294901760, %v7790_v6  ;;  %v7891_v30 = vand.u32 4294901760, %v7793_v7 }
  0x45   : > { %6479 = vmatpush3.bf16.xpose.msra.mxu1 %v7610_v50  ;;  %6289 = vmatprep.subr.bf16.mxu0 %v7642_v0  ;;  %9541 = vst [vmem:[#allocation31_spill] sm:$0xff] %v7793_v7  ;;  %9542 = vst [vmem:[#allocation32_spill] sm:$0xff] %v7795_v12  ;;  %v7840_v9 = vsub.f32 %v7531_v21, %v9551_v49  ;;  %v7852_v50 = vsel %vm366_vm0, %v274_v29, 0  ;;  %v9558_v49 = vand.u32 4294901760, %v7763_v22  ;;  %v7872_v29 = vsel %vm366_vm0, %v291_v13, 0 }
  0x46   : > { %6481 = vmatprep.subr.bf16.mxu1 %v7648_v2  ;;  %9543 = vst [vmem:[#allocation33_spill] sm:$0xff] %v7802_v14  ;;  %9544 = vst [vmem:[#allocation34_spill] sm:$0xff] %v7805_v15  ;;  %v7902_v13 = vand.u32 4294901760, %v7802_v14 }
  0x47   : > { %9545 = vst [vmem:[#allocation35_spill] sm:$0xff] %v7817_v44  ;;  %9548 = vst [vmem:[#allocation37_spill] sm:$0xff] %v7830_v23  ;;  %v9571_v5 = vand.u32 4294901760, %v7840_v9 }
  0x48   : > { %9552 = vst [vmem:[#allocation39_spill] sm:$0xff] %v7840_v9  ;;  %9562 = vst [vmem:[#allocation44_spill] sm:$0xff] %v7872_v29 }
  0x49   : > { %9567 = vst [vmem:[#allocation45_spill] sm:$0xff] %v7891_v30  ;;  %9568 = vst [vmem:[#allocation46_spill] sm:$0xff] %v7902_v13 }
  0x4c   : > { %6291 = vmatpush3.bf16.xpose.msra.mxu0 %v7642_v0  ;;  %v7835_v0 = vsub.f32 %v7528_v20, %v9549_v46  ;;  %v7855_v20 = vsel %vm366_vm0, %v275_v16, 0  ;;  %v9556_v46 = vand.u32 4294901760, %v7544_v27  ;;  %v9563_v16 = vand.u32 4294901760, %v7768_v59 }
  0x4d   : > { %6483 = vmatpush3.bf16.xpose.msra.mxu1 %v7648_v2  ;;  %6293 = vmatprep.subr.bf16.mxu0 %v7678_v45  ;;  %v9546_v2 = vand.u32 4294901760, %v7525_v19 }
  0x4e   : > { %6485 = vmatprep.subr.bf16.mxu1 %v7687_v47  ;;  %9550 = vst [vmem:[#allocation38_spill] sm:$0xff] %v7835_v0  ;;  %v7860_v21 = vsub.f32 %v7544_v27, %v9556_v46  ;;  %v611_v27 = vsub.f32 %v7776_v61, %v9564_v37  ;;  %v9565_v46 = vand.u32 4294901760, %v7781_v62  ;;  %v7894_v37 = vsub.f32 %v380_v40, %v7795_v12 }
  0x4f   : > { %v7827_v56 = vsub.f32 %v7525_v19, %v9546_v2  ;;  %v9554_v19 = vand.u32 4294901760, %v7760_v25  ;;  %v1483_v40 = vand.u32 4294901760, %v7872_v29  ;;  %v9570_v43 = vand.u32 4294901760, %v7835_v0 }
  0x50   : > { %9557 = vst [vmem:[#allocation41_spill] sm:$0xff] %v7860_v21  ;;  %v1602_v34 = vsub.f32 %v7781_v62, %v9565_v46  ;;  %v482_v46 = vand.u32 4294901760, %v7852_v50  ;;  %v612_v24 = vand.u32 4294901760, %v611_v27  ;;  %v9573_v27 = vand.u32 4294901760, %v7567_v35 }
  0x51   : > { %9547 = vst [vmem:[#allocation36_spill] sm:$0xff] %v7827_v56  ;;  %v9569_v42 = vand.u32 4294901760, %v7827_v56  ;;  %v7917_v55 = vsub.f32 %v7835_v0, %v9570_v43  ;;  %v9576_v43 = vand.u32 4294901760, %v7860_v21  ;;  %v7957_v29 = vand.u32 4294901760, %v7894_v37 }
  0x52   : > { %v1603_v41 = vand.u32 4294901760, %v1602_v34 }
  0x53   : > { %9581 = vst [vmem:[#allocation52_spill] sm:$0xff] %v7957_v29 }
  0x54   : > { %6295 = vmatpush3.bf16.xpose.msra.mxu0 %v7678_v45  ;;  %v7843_v45 = vsel %vm366_vm0, %v299_v18, 0  ;;  %v9559_v18 = vand.u32 4294901760, %v7771_v11 }
  0x55   : > { %6487 = vmatpush3.bf16.xpose.msra.mxu1 %v7687_v47  ;;  %6297 = vmatprep.subr.bf16.mxu0 %v7742_v39  ;;  %v9553_v47 = vand.u32 4294901760, %v7745_v32 }
  0x56   : > { %6489 = vmatprep.subr.bf16.mxu1 %v7757_v17  ;;  %v7866_v48 = vpack.c.bf16 %v9559_v18, %v9558_v49  ;;  %v9566_v49 = vand.u32 4294901760, %v7786_v58  ;;  %v7912_v18 = vsub.f32 %v7827_v56, %v9569_v42  ;;  %v7932_v42 = vsub.f32 %v7567_v35, %v9573_v27 }
  0x57   : > { %v7849_v2 = vpack.c.bf16 %v9554_v19, %v9553_v47  ;;  %v7869_v47 = vsel %vm366_vm0, %v290_v28, 0  ;;  %v604_v19 = vsub.f32 %v7768_v59, %v9563_v16  ;;  %v9579_v35 = vand.u32 4294901760, %v7570_v36 }
  0x58   : > { %9560 = vst [vmem:[#allocation42_spill] sm:$0xff] %v7866_v48  ;;  %9561 = vst [vmem:[#allocation43_spill] sm:$0xff] %v7869_v47  ;;  %v1609_v28 = vsub.f32 %v7786_v58, %v9566_v49  ;;  %v485_v49 = vand.u32 4294901760, %v7855_v20  ;;  %v1480_v16 = vand.u32 4294901760, %v7869_v47 }
  0x59   : > { %9555 = vst [vmem:[#allocation40_spill] sm:$0xff] %v7849_v2  ;;  %9574 = vst [vmem:[#allocation47_spill] sm:$0xff] %v7932_v42  ;;  %v7954_v27 = vsub.f32 %v7570_v36, %v9579_v35  ;;  %v543_v35 = vsub.f32 %v7793_v7, %v7891_v30 }
  0x5a   : > { %v1610_v12 = vand.u32 4294901760, %v1609_v28  ;;  %v7934_v28 = vpack.c.bf16 %v485_v49, %v482_v46 }
  0x5b   : > { %9580 = vst [vmem:[#allocation51_spill] sm:$0xff] %v7954_v27 }
  0x5c   : > { %6299 = vmatpush3.bf16.xpose.msra.mxu0 %v7742_v39  ;;  %v605_v39 = vand.u32 4294901760, %v604_v19  ;;  %v7922_v19 = vsub.f32 %v7840_v9, %v9571_v5  ;;  %9575 = vst [vmem:[#allocation48_spill] sm:$0xff] %v7934_v28  ;;  %v7943_v5 = vsub.f32 %v7748_v31, %v7805_v15  ;;  %v7964_v31 = vpack.c.bf16 %v1610_v12, %v1603_v41 }
  0x5d   : > { %6491 = vmatpush3.bf16.xpose.msra.mxu1 %v7757_v17  ;;  %6301 = vmatprep.subr.bf16.mxu0 %v7849_v2  ;;  %v533_v17 = vsub.f32 %v7790_v6, %v7830_v23  ;;  %v9572_v23 = vand.u32 4294901760, %v7557_v33  ;;  %v7939_v6 = vsub.f32 %v7860_v21, %v9576_v43  ;;  %v7960_v43 = vand.u32 4294901760, %v7843_v45 }
  0x5e   : > { %6493 = vmatprep.subr.bf16.mxu1 %v7866_v48  ;;  %v7962_v47 = vpack.c.bf16 %v612_v24, %v605_v39  ;;  %v1617_v36 = vand.u32 4294901760, %v7922_v19  ;;  %v9583_v39 = vand.u32 4294901760, %v7581_v38  ;;  %v9586_v12 = vand.u32 4294901760, %v7616_v52 }
  0x5f   : > { %v7927_v34 = vsub.f32 %v7557_v33, %v9572_v23  ;;  %v7947_v33 = vsub.f32 %v7751_v26, %v7817_v44  ;;  %v7949_v23 = vpack.c.bf16 %v1483_v40, %v1480_v16  ;;  %v7966_v15 = vand.u32 4294901760, %v533_v17 }
  0x60   : > { %9582 = vst [vmem:[#allocation53_spill] sm:$0xff] %v7962_v47  ;;  %v619_v26 = vand.u32 4294901760, %v7912_v18  ;;  %v626_v44 = vand.u32 4294901760, %v7917_v55  ;;  %v1624_v24 = vand.u32 4294901760, %v7939_v6  ;;  %v7980_v41 = vsub.f32 %v7581_v38, %v9583_v39 }
  0x61   : > { %9577 = vst [vmem:[#allocation49_spill] sm:$0xff] %v7947_v33  ;;  %9578 = vst [vmem:[#allocation50_spill] sm:$0xff] %v7949_v23  ;;  %v9585_v17 = vand.u32 4294901760, %v7613_v51  ;;  %v7990_v18 = vsub.f32 %v7616_v52, %v9586_v12  ;;  %v9587_v6 = vand.u32 4294901760, %v7619_v53  ;;  %v9588_v38 = vand.u32 4294901760, %v7622_v54 }
  0x62   : > { %9584 = vst [vmem:[#allocation54_spill] sm:$0xff] %v7980_v41  ;;  %v9590_v52 = vand.u32 4294901760, %v7654_v4  ;;  %v9591_v19 = vand.u32 4294901760, %v7657_v8 }
  0x63   : > { %v7985_v55 = vsub.f32 %v7613_v51, %v9585_v17  ;;  %v7997_v33 = vsub.f32 %v7619_v53, %v9587_v6  ;;  %v8002_v39 = vsub.f32 %v7622_v54, %v9588_v38  ;;  %v9589_v51 = vand.u32 4294901760, %v7651_v3 }
  0x64   : > { %6303 = vmatpush3.bf16.xpose.msra.mxu0 %v7849_v2  ;;  %v8012_v12 = vsub.f32 %v7654_v4, %v9590_v52  ;;  %v8017_v53 = vsub.f32 %v7657_v8, %v9591_v19  ;;  %v9592_v6 = vand.u32 4294901760, %v7660_v10  ;;  %v9593_v38 = vand.u32 4294901760, %v7690_v57 }
  0x65   : > { %6495 = vmatpush3.bf16.xpose.msra.mxu1 %v7866_v48  ;;  %6305 = vmatprep.subr.bf16.mxu0 %v7934_v28  ;;  %v8007_v17 = vsub.f32 %v7651_v3, %v9589_v51  ;;  %v9594_v51 = vand.u32 4294901760, %v7693_v60  ;;  %v9595_v52 = vand.u32 4294901760, %v7702_v63  ;;  %v9596_v19 = vand.u32 4294901760, %v7705_v1 }
  0x66   : > { %6497 = vmatprep.subr.bf16.mxu1 %v7949_v23  ;;  %v8022_v54 = vsub.f32 %v7660_v10, %v9592_v6  ;;  %v8027_v3 = vsub.f32 %v7690_v57, %v9593_v38  ;;  %v8046_v6 = vpack.c.bf16 %v7776_v61, %v7768_v59  ;;  %v9598_v57 = vand.u32 4294901760, %v7745_v32 }
  0x67   : > { %v8032_v4 = vsub.f32 %v7693_v60, %v9594_v51  ;;  %v8037_v8 = vsub.f32 %v7702_v63, %v9595_v52  ;;  %v8042_v10 = vsub.f32 %v7705_v1, %v9596_v19  ;;  %v9599_v60 = vand.u32 4294901760, %v7760_v25 }
  0x68   : > { %9597 = vst [vmem:[#allocation55_spill] sm:$0xff] %v8046_v6  ;;  %v8051_v38 = vsub.f32 %v7745_v32, %v9598_v57  ;;  %v9600_v63 = vand.u32 4294901760, %v7763_v22  ;;  %v9601_v1 = vand.u32 4294901760, %v7771_v11  ;;  %v553_v32 = vsub.f32 %v7802_v14, %v7902_v13 }
  0x69   : > { %v8056_v51 = vsub.f32 %v7760_v25, %v9599_v60  ;;  %v8073_v57 = vsub.f32 %v7852_v50, %v482_v46  ;;  %v8077_v25 = vpack.c.bf16 %v7786_v58, %v7781_v62  ;;  %v8088_v60 = vpack.c.bf16 %v7860_v21, %v7840_v9  ;;  %v9606_v50 = vld [vmem:[#allocation43_spill] sm:$0xff] }
  0x6a   : > { %v8061_v52 = vsub.f32 %v7763_v22, %v9600_v63  ;;  %v8066_v19 = vsub.f32 %v7771_v11, %v9601_v1  ;;  %v8080_v22 = vsub.f32 %v7855_v20, %v485_v49  ;;  %v8084_v11 = vpack.c.bf16 %v7835_v0, %v7827_v56  ;;  %v9607_v1 = vld [vmem:[#allocation44_spill] sm:$0xff] }
  0x6b   : > { %9602 = vst [vmem:[#allocation56_spill] sm:$0xff] %v8077_v25  ;;  %9604 = vst [vmem:[#allocation58_spill] sm:$0xff] %v8088_v60  ;;  %v8092_v63 = vpack.c.bf16 %v7932_v42, %v7927_v34  ;;  %v8096_v46 = vsub.f32 %v9606_v50, %v1480_v16  ;;  %v8099_v20 = vsub.f32 %v9607_v1, %v1483_v40  ;;  %v8142_v0 = vand.u32 4294901760, %v7943_v5 }
  0x6c   : > { %9603 = vst [vmem:[#allocation57_spill] sm:$0xff] %v8084_v11  ;;  %6307 = vmatpush3.bf16.xpose.msra.mxu0 %v7934_v28  ;;  %v8103_v49 = vpack.c.bf16 %v7980_v41, %v7954_v27  ;;  %v8107_v13 = vpack.c.bf16 %v7990_v18, %v7985_v55  ;;  %v8114_v16 = vpack.c.bf16 %v8002_v39, %v7997_v33  ;;  %v9620_v28 = vand.u32 4294901760, %v7927_v34 }
  0x6d   : > { %9605 = vst [vmem:[#allocation59_spill] sm:$0xff] %v8092_v63  ;;  %6499 = vmatpush3.bf16.xpose.msra.mxu1 %v7949_v23  ;;  %6309 = vmatprep.subr.bf16.mxu0 %v7962_v47  ;;  %v8118_v40 = vpack.c.bf16 %v8012_v12, %v8007_v17  ;;  %v8122_v50 = vpack.c.bf16 %v8022_v54, %v8017_v53  ;;  %9617 = vst [vmem:[#allocation67_spill] sm:$0xff] %v8142_v0  ;;  %v9621_v48 = vand.u32 4294901760, %v7932_v42 }
  0x6e   : > { %9608 = vst [vmem:[#allocation43_spill] sm:$0xff] %v8103_v49  ;;  %9609 = vst [vmem:[#allocation44_spill] sm:$0xff] %v8107_v13  ;;  %6501 = vmatprep.subr.bf16.mxu1 %v7964_v31  ;;  %v8127_v1 = vpack.c.bf16 %v8032_v4, %v8027_v3  ;;  %v8131_v30 = vpack.c.bf16 %v8042_v10, %v8037_v8  ;;  %v8135_v21 = vpack.c.bf16 %v8056_v51, %v8051_v38 }
  0x6f   : > { %9610 = vst [vmem:[#allocation60_spill] sm:$0xff] %v8114_v16  ;;  %9611 = vst [vmem:[#allocation61_spill] sm:$0xff] %v8118_v40  ;;  %v8139_v9 = vpack.c.bf16 %v8066_v19, %v8061_v52  ;;  %v8146_v56 = vsub.f32 %v7843_v45, %v7960_v43  ;;  %v8150_v58 = vpack.c.bf16 %v8080_v22, %v8073_v57  ;;  %v9622_v14 = vand.u32 4294901760, %v7954_v27 }
  0x70   : > { %9612 = vst [vmem:[#allocation62_spill] sm:$0xff] %v8122_v50  ;;  %9613 = vst [vmem:[#allocation63_spill] sm:$0xff] %v8127_v1  ;;  %v8154_v62 = vpack.c.bf16 %v8099_v20, %v8096_v46  ;;  %v563_v61 = vsub.f32 %v7894_v37, %v7957_v29  ;;  %v8158_v59 = vpack.c.bf16 %v626_v44, %v619_v26  ;;  %v544_v44 = vand.u32 4294901760, %v543_v35  ;;  %v9624_v26 = vld [vmem:[#allocation49_spill] sm:$0xff] }
  0x71   : > { %9614 = vst [vmem:[#allocation64_spill] sm:$0xff] %v8131_v30  ;;  %9615 = vst [vmem:[#allocation65_spill] sm:$0xff] %v8135_v21  ;;  %v8160_v23 = vpack.c.bf16 %v1624_v24, %v1617_v36  ;;  %v632_v45 = vsub.f32 %v7927_v34, %v9620_v28  ;;  %v639_v2 = vsub.f32 %v7932_v42, %v9621_v48  ;;  %v8175_v36 = vand.u32 4294901760, %v9624_v26 }
  0x72   : > { %9616 = vst [vmem:[#allocation66_spill] sm:$0xff] %v8139_v9  ;;  %9618 = vst [vmem:[#allocation68_spill] sm:$0xff] %v8150_v58  ;;  %v1630_v7 = vsub.f32 %v7954_v27, %v9622_v14  ;;  %v554_v24 = vand.u32 4294901760, %v553_v32  ;;  %v573_v28 = vsub.f32 %v7943_v5, %v8142_v0  ;;  %v8181_v48 = vand.u32 4294901760, %v8146_v56 }
  0x73   : > { %9619 = vst [vmem:[#allocation69_spill] sm:$0xff] %v8154_v62  ;;  %v9623_v62 = vand.u32 4294901760, %v7980_v41  ;;  %5253 = vmatmul.mubr.f32.vlgmr.msra.gmra.mrb[0].mxu0 %v7966_v15  ;;  %v9368_v14 = vand.u32 4294901760, %v7985_v55  ;;  %v633_v35 = vand.u32 4294901760, %v632_v45  ;;  %v9363_v32 = vand.u32 4294901760, %v7990_v18 }
  0x74   : > { %6311 = vmatpush3.bf16.xpose.msra.mxu0 %v7962_v47  ;;  %5517 = vmatmul.mubr.f32.vlgmr.msra.gmra.mrb[0].mxu1 %v7966_v15  ;;  %v9362_v0 = vand.u32 4294901760, %v7997_v33  ;;  %v1631_v27 = vand.u32 4294901760, %v1630_v7  ;;  %v574_v15 = vand.u32 4294901760, %v573_v28 }
  0x75   : > { %v1637_v29 = vsub.f32 %v7980_v41, %v9623_v62  ;;  %v564_v62 = vand.u32 4294901760, %v563_v61  ;;  %6503 = vmatpush3.bf16.xpose.msra.mxu1 %v7964_v31  ;;  %6313 = vmatprep.subr.bf16.mxu0 %v8158_v59  ;;  %v640_v41 = vand.u32 4294901760, %v639_v2  ;;  %v583_v61 = vsub.f32 %v9624_v26, %v8175_v36 }
  0x76   : > { %6505 = vmatprep.subr.bf16.mxu1 %v8160_v23  ;;  %5255 = vmatprep.mubr.f32.mxu0 %v544_v44  ;;  %v593_v2 = vsub.f32 %v8146_v56, %v8181_v48  ;;  %v646_v7 = vsub.f32 %v7985_v55, %v9368_v14 }
  0x77   : > { %v1638_v42 = vand.u32 4294901760, %v1637_v29  ;;  %5519 = vmatprep.mubr.f32.mxu1 %v544_v44  ;;  %5256 = vmatmul.mubr.f32.gmra.mrb[2].mxu0 %v554_v24  ;;  %v8196_v45 = vpack.c.bf16 %v640_v41, %v633_v35  ;;  %v653_v29 = vsub.f32 %v7990_v18, %v9363_v32  ;;  %v1644_v44 = vsub.f32 %v7997_v33, %v9362_v0 }
  0x78   : > { %5520 = vmatmul.mubr.f32.gmra.mrb[2].mxu1 %v554_v24  ;;  %5258 = vmatprep.mubr.f32.mxu0 %v564_v62  ;;  %v9627_v24 = vand.u32 4294901760, %v8002_v39  ;;  %v584_v28 = vand.u32 4294901760, %v583_v61  ;;  %v594_v35 = vand.u32 4294901760, %v593_v2  ;;  %v9364_v0 = vand.u32 4294901760, %v8012_v12 }
  0x79   : > { %9625 = vst [vmem:[#allocation49_spill] sm:$0xff] %v8196_v45  ;;  %5522 = vmatprep.mubr.f32.mxu1 %v564_v62  ;;  %v8204_v47 = vpack.c.bf16 %v1638_v42, %v1631_v27  ;;  %v647_v42 = vand.u32 4294901760, %v646_v7  ;;  %v654_v27 = vand.u32 4294901760, %v653_v29  ;;  %v9366_v62 = vand.u32 4294901760, %v8007_v17 }
  0x7a   : > { %v1651_v41 = vsub.f32 %v8002_v39, %v9627_v24  ;;  %v1645_v32 = vand.u32 4294901760, %v1644_v44  ;;  %v9365_v61 = vand.u32 4294901760, %v8017_v53  ;;  %v9367_v2 = vand.u32 4294901760, %v8022_v54 }
  0x7b   : > { %9626 = vst [vmem:[#allocation70_spill] sm:$0xff] %v8204_v47  ;;  %5259 = vmatmul.mubr.f32.gmra.mrb[4].mxu0 %v574_v15  ;;  %v8221_v7 = vpack.c.bf16 %v654_v27, %v647_v42  ;;  %v660_v29 = vsub.f32 %v8007_v17, %v9366_v62  ;;  %v667_v44 = vsub.f32 %v8012_v12, %v9364_v0  ;;  %v9373_v0 = vand.u32 4294901760, %v8027_v3 }
  0x7c   : > { %6315 = vmatpush3.bf16.xpose.msra.mxu0 %v8158_v59  ;;  %5523 = vmatmul.mubr.f32.gmra.mrb[4].mxu1 %v574_v15  ;;  %v1652_v24 = vand.u32 4294901760, %v1651_v41  ;;  %v9628_v15 = vld [vmem:[#allocation8_spill] sm:$0xff]  ;;  %v9372_v62 = vand.u32 4294901760, %v8037_v8 }
  0x7d   : > { %6507 = vmatpush3.bf16.xpose.msra.mxu1 %v8160_v23  ;;  %6317 = vmatprep.subr.bf16.mxu0 %v8196_v45  ;;  %9629 = vst [vmem:[#allocation8_spill] sm:$0xff] %v8221_v7  ;;  %v661_v42 = vand.u32 4294901760, %v660_v29  ;;  %v668_v27 = vand.u32 4294901760, %v667_v44 }
  0x7e   : > { %6509 = vmatprep.subr.bf16.mxu1 %v8204_v47  ;;  %5261 = vmatprep.mubr.f32.mxu0 %v584_v28  ;;  %v8230_v41 = vpack.c.bf16 %v1652_v24, %v1645_v32  ;;  %v9371_v32 = vand.u32 4294901760, %v8032_v4 }
  0x7f   : > { %5525 = vmatprep.mubr.f32.mxu1 %v584_v28  ;;  %5262 = vmatmul.mubr.f32.gmra.mrb[6].mxu0 %v594_v35  ;;  %v1658_v28 = vsub.f32 %v8017_v53, %v9365_v61  ;;  %v8246_v14 = vpack.c.bf16 %v668_v27, %v661_v42 }
  0x80   : > { %5526 = vmatmul.mubr.f32.gmra.mrb[6].mxu1 %v594_v35  ;;  %5296 = vmatprep.mubr.f32.mxu0 %v9628_v15  ;;  %9630 = vst [vmem:[#allocation71_spill] sm:$0xff] %v8230_v41  ;;  %v1665_v35 = vsub.f32 %v8022_v54, %v9367_v2  ;;  %v9374_v2 = vand.u32 4294901760, %v8042_v10  ;;  %v681_v29 = vsub.f32 %v8032_v4, %v9371_v32  ;;  %v9381_v32 = vand.u32 4294901760, %v8051_v38 }
  0x81   : > { %5560 = vmatprep.mubr.f32.mxu1 %v9628_v15  ;;  %v1659_v24 = vand.u32 4294901760, %v1658_v28  ;;  %9631 = vst [vmem:[#allocation72_spill] sm:$0xff] %v8246_v14  ;;  %v1672_v28 = vsub.f32 %v8037_v8, %v9372_v62 }
  0x82   : > { %v1666_v61 = vand.u32 4294901760, %v1665_v35  ;;  %v1679_v35 = vsub.f32 %v8042_v10, %v9374_v2  ;;  %v682_v27 = vand.u32 4294901760, %v681_v29  ;;  %v9382_v2 = vand.u32 4294901760, %v8066_v19 }
  0x84   : > { %6319 = vmatpush3.bf16.xpose.msra.mxu0 %v8196_v45  ;;  %v8254_v44 = vpack.c.bf16 %v1666_v61, %v1659_v24  ;;  %v9379_v61 = vand.u32 4294901760, %v8056_v51  ;;  %v1673_v24 = vand.u32 4294901760, %v1672_v28  ;;  %v1680_v62 = vand.u32 4294901760, %v1679_v35 }
  0x85   : > { %6511 = vmatpush3.bf16.xpose.msra.mxu1 %v8204_v47  ;;  %6321 = vmatprep.subr.bf16.mxu0 %v8221_v7  ;;  %v674_v47 = vsub.f32 %v8027_v3, %v9373_v0  ;;  %v9380_v0 = vand.u32 4294901760, %v8061_v52  ;;  %v1693_v35 = vsub.f32 %v8066_v19, %v9382_v2  ;;  %v9389_v2 = vand.u32 4294901760, %v8099_v20 }
  0x86   : > { %6513 = vmatprep.subr.bf16.mxu1 %v8230_v41  ;;  %9632 = vst [vmem:[#allocation73_spill] sm:$0xff] %v8254_v44  ;;  %v8278_v29 = vpack.c.bf16 %v1680_v62, %v1673_v24  ;;  %v9387_v62 = vand.u32 4294901760, %v8080_v22 }
  0x87   : > { %v675_v42 = vand.u32 4294901760, %v674_v47  ;;  %v695_v47 = vsub.f32 %v8056_v51, %v9379_v61  ;;  %v1686_v28 = vsub.f32 %v8061_v52, %v9380_v0  ;;  %v9388_v61 = vand.u32 4294901760, %v8073_v57 }
  0x88   : > { %9634 = vst [vmem:[#allocation75_spill] sm:$0xff] %v8278_v29  ;;  %v1694_v0 = vand.u32 4294901760, %v1693_v35  ;;  %v1707_v35 = vsub.f32 %v8099_v20, %v9389_v2  ;;  %v9648_v2 = vld [vmem:[#allocation10_spill] sm:$0xff] }
  0x89   : > { %v8270_v45 = vpack.c.bf16 %v682_v27, %v675_v42  ;;  %v696_v27 = vand.u32 4294901760, %v695_v47  ;;  %v1687_v24 = vand.u32 4294901760, %v1686_v28 }
  0x8b   : > { %9633 = vst [vmem:[#allocation74_spill] sm:$0xff] %v8270_v45  ;;  %v8302_v47 = vpack.c.bf16 %v1694_v0, %v1687_v24  ;;  %v1708_v24 = vand.u32 4294901760, %v1707_v35  ;;  %v9642_v35 = vld [vmem:[#allocation32_spill] sm:$0xff] }
  0x8c   : > { %6323 = vmatpush3.bf16.xpose.msra.mxu0 %v8221_v7 }
  0x8d   : > { %6515 = vmatpush3.bf16.xpose.msra.mxu1 %v8230_v41  ;;  %6325 = vmatprep.subr.bf16.mxu0 %v8246_v14  ;;  %v688_v41 = vsub.f32 %v8051_v38, %v9381_v32  ;;  %v9390_v32 = vand.u32 4294901760, %v8096_v46  ;;  %9636 = vst [vmem:[#allocation77_spill] sm:$0xff] %v8302_v47 }
  0x8e   : > { %6517 = vmatprep.subr.bf16.mxu1 %v8254_v44 }
  0x8f   : > { %v689_v42 = vand.u32 4294901760, %v688_v41  ;;  %v709_v41 = vsub.f32 %v8080_v22, %v9387_v62  ;;  %v1700_v28 = vsub.f32 %v8096_v46, %v9390_v32  ;;  %v9649_v32 = vld [vmem:[#allocation30_spill] sm:$0xff] }
  0x91   : > { %v8294_v7 = vpack.c.bf16 %v696_v27, %v689_v42  ;;  %v710_v27 = vand.u32 4294901760, %v709_v41  ;;  %v1701_v0 = vand.u32 4294901760, %v1700_v28  ;;  %v9640_v41 = vld [vmem:[#allocation22_spill] sm:$0xff]  ;;  %v9641_v28 = vld [vmem:[#allocation23_spill] sm:$0xff] }
  0x93   : > { %9635 = vst [vmem:[#allocation76_spill] sm:$0xff] %v8294_v7 }
  0x94   : > { %6327 = vmatpush3.bf16.xpose.msra.mxu0 %v8246_v14 }
  0x95   : > { %6519 = vmatpush3.bf16.xpose.msra.mxu1 %v8254_v44  ;;  %6329 = vmatprep.subr.bf16.mxu0 %v8270_v45  ;;  %v702_v44 = vsub.f32 %v8073_v57, %v9388_v61  ;;  %v8316_v61 = vpack.c.bf16 %v1708_v24, %v1701_v0  ;;  %v9645_v0 = vld [vmem:[#allocation13_spill] sm:$0xff] }
  0x96   : > { %6521 = vmatprep.subr.bf16.mxu1 %v8278_v29  ;;  %v9646_v24 = vld [vmem:[#allocation69_spill] sm:$0xff] }
  0x97   : > { %v703_v42 = vand.u32 4294901760, %v702_v44  ;;  %9638 = vst [vmem:[#allocation79_spill] sm:$0xff] %v8316_v61  ;;  %v9639_v44 = vld [vmem:[#allocation21_spill] sm:$0xff] }
  0x99   : > { %v8314_v62 = vpack.c.bf16 %v710_v27, %v703_v42  ;;  %v9643_v42 = vld [vmem:[#allocation34_spill] sm:$0xff]  ;;  %v9644_v27 = vld [vmem:[#allocation35_spill] sm:$0xff] }
  0x9b   : > { %9637 = vst [vmem:[#allocation78_spill] sm:$0xff] %v8314_v62 }
  0x9c   : > { %6331 = vmatpush3.bf16.xpose.msra.mxu0 %v8270_v45  ;;  %v9684_v45 = vld [vmem:[#allocation41_spill] sm:$0xff] }
  0x9d   : > { %6523 = vmatpush3.bf16.xpose.msra.mxu1 %v8278_v29  ;;  %6333 = vmatprep.subr.bf16.mxu0 %v8294_v7  ;;  %v9679_v29 = vld [vmem:[#allocation38_spill] sm:$0xff] }
  0x9e   : > { %6525 = vmatprep.subr.bf16.mxu1 %v8302_v47 }
  0xa4   : > { %6335 = vmatpush3.bf16.xpose.msra.mxu0 %v8294_v7  ;;  %v9677_v7 = vld [vmem:[#allocation36_spill] sm:$0xff] }
  0xa5   : > { %6527 = vmatpush3.bf16.xpose.msra.mxu1 %v8302_v47  ;;  %6337 = vmatprep.subr.bf16.mxu0 %v8314_v62 }
  0xa6   : > { %6529 = vmatprep.subr.bf16.mxu1 %v8316_v61 }
  0xac   : > { %6339 = vmatpush3.bf16.xpose.msra.mxu0 %v8314_v62 }
  0xad   : > { %6531 = vmatpush3.bf16.xpose.msra.mxu1 %v8316_v61  ;;  %6341 = vmatprep.subr.bf16.mxu0 %v8046_v6  ;;  %v9674_v61 = vld [vmem:[#allocation29_spill] sm:$0xff] }
  0xae   : > { %6533 = vmatprep.subr.bf16.mxu1 %v8077_v25  ;;  %v9675_v62 = vand.u32 4294901760, %v9674_v61  ;;  %v9685_v61 = vand.u32 4294901760, %v9684_v45  ;;  %v9690_v45 = vld [vmem:[#allocation52_spill] sm:$0xff] }
  0xb3   : > { %5297 = vmatmul.mubr.f32.vlgmr.msra.gmra.mrb[0].mxu0 %v9639_v44 }
  0xb4   : > { %6343 = vmatpush3.bf16.xpose.msra.mxu0 %v8046_v6  ;;  %5561 = vmatmul.mubr.f32.vlgmr.msra.gmra.mrb[0].mxu1 %v9639_v44 }
  0xb5   : > { %6535 = vmatpush3.bf16.xpose.msra.mxu1 %v8077_v25  ;;  %6345 = vmatprep.subr.bf16.mxu0 %v8084_v11  ;;  %v9672_v25 = vld [vmem:[#allocation28_spill] sm:$0xff] }
  0xb6   : > { %6537 = vmatprep.subr.bf16.mxu1 %v8088_v60  ;;  %5299 = vmatprep.mubr.f32.mxu0 %v9640_v41  ;;  %v9673_v6 = vand.u32 4294901760, %v9672_v25 }
  0xb7   : > { %5563 = vmatprep.mubr.f32.mxu1 %v9640_v41  ;;  %5300 = vmatmul.mubr.f32.gmra.mrb[2].mxu0 %v9641_v28 }
  0xb8   : > { %5564 = vmatmul.mubr.f32.gmra.mrb[2].mxu1 %v9641_v28  ;;  %5302 = vmatprep.mubr.f32.mxu0 %v9642_v35  ;;  %v8428_v47 = vpack.c.bf16 %v9675_v62, %v9673_v6  ;;  %v9687_v62 = vld [vmem:[#allocation37_spill] sm:$0xff] }
  0xb9   : > { %5566 = vmatprep.mubr.f32.mxu1 %v9642_v35 }
  0xba   : > { %9676 = vst [vmem:[#allocation22_spill] sm:$0xff] %v8428_v47 }
  0xbb   : > { %5303 = vmatmul.mubr.f32.gmra.mrb[4].mxu0 %v9643_v42 }
  0xbc   : > { %6347 = vmatpush3.bf16.xpose.msra.mxu0 %v8084_v11  ;;  %5567 = vmatmul.mubr.f32.gmra.mrb[4].mxu1 %v9643_v42 }
  0xbd   : > { %6539 = vmatpush3.bf16.xpose.msra.mxu1 %v8088_v60  ;;  %6349 = vmatprep.subr.bf16.mxu0 %v8092_v63 }
  0xbe   : > { %6541 = vmatprep.subr.bf16.mxu1 %v8103_v49  ;;  %5305 = vmatprep.mubr.f32.mxu0 %v9644_v27 }
  0xbf   : > { %5569 = vmatprep.mubr.f32.mxu1 %v9644_v27  ;;  %5306 = vmatmul.mubr.f32.gmra.mrb[6].mxu0 %v7960_v43 }
  0xc0   : > { %5570 = vmatmul.mubr.f32.gmra.mrb[6].mxu1 %v7960_v43  ;;  %5340 = vmatprep.mubr.f32.mxu0 %v9645_v0 }
  0xc1   : > { %5604 = vmatprep.mubr.f32.mxu1 %v9645_v0  ;;  %v9647_v0 = vld [vmem:[#allocation9_spill] sm:$0xff] }
  0xc4   : > { %6351 = vmatpush3.bf16.xpose.msra.mxu0 %v8092_v63  ;;  %v9669_v63 = vld [vmem:[#allocation27_spill] sm:$0xff] }
  0xc5   : > { %6543 = vmatpush3.bf16.xpose.msra.mxu1 %v8103_v49  ;;  %6353 = vmatprep.subr.bf16.mxu0 %v8107_v13  ;;  %v9670_v60 = vand.u32 4294901760, %v9669_v63  ;;  %v9680_v63 = vand.u32 4294901760, %v9679_v29  ;;  %v9689_v29 = vld [vmem:[#allocation46_spill] sm:$0xff] }
  0xc6   : > { %6545 = vmatprep.subr.bf16.mxu1 %v8114_v16 }
  0xcc   : > { %6355 = vmatpush3.bf16.xpose.msra.mxu0 %v8107_v13  ;;  %v9667_v13 = vld [vmem:[#allocation26_spill] sm:$0xff] }
  0xcd   : > { %6547 = vmatpush3.bf16.xpose.msra.mxu1 %v8114_v16  ;;  %6357 = vmatprep.subr.bf16.mxu0 %v8118_v40  ;;  %v9666_v16 = vld [vmem:[#allocation50_spill] sm:$0xff]  ;;  %v9668_v49 = vand.u32 4294901760, %v9667_v13  ;;  %v9678_v13 = vand.u32 4294901760, %v9677_v7  ;;  %v9688_v7 = vld [vmem:[#allocation45_spill] sm:$0xff] }
  0xce   : > { %6549 = vmatprep.subr.bf16.mxu1 %v8122_v50 }
  0xcf   : > { %v8422_v11 = vpack.c.bf16 %v9670_v60, %v9668_v49  ;;  %v8438_v60 = vpack.c.bf16 %v9680_v63, %v9678_v13  ;;  %v9682_v49 = vld [vmem:[#allocation39_spill] sm:$0xff]  ;;  %v9691_v13 = vand.u32 4294901760, %v7927_v34  ;;  %v9701_v34 = vand.u32 4294901760, %v7985_v55 }
  0xd0   : > { %v9683_v25 = vand.u32 4294901760, %v9682_v49  ;;  %v9692_v63 = vld [vmem:[#allocation47_spill] sm:$0xff]  ;;  %v9707_v55 = vand.u32 4294901760, %v8007_v17  ;;  %v9713_v17 = vand.u32 4294901760, %v8027_v3  ;;  %v9719_v3 = vand.u32 4294901760, %v8051_v38 }
  0xd1   : > { %9671 = vst [vmem:[#allocation21_spill] sm:$0xff] %v8422_v11  ;;  %9681 = vst [vmem:[#allocation23_spill] sm:$0xff] %v8438_v60  ;;  %v9693_v49 = vand.u32 4294901760, %v9692_v63  ;;  %v9725_v38 = vand.u32 4294901760, %v8073_v57  ;;  %v8578_v57 = vld [vmem:[%s9256_s3 + $0x10] sm:$0xff] }
  0xd2   : > { %v8444_v6 = vpack.c.bf16 %v9685_v61, %v9683_v25  ;;  %v9695_v61 = vld [vmem:[#allocation51_spill] sm:$0xff]  ;;  %9731 = vst [vmem:[#allocation26_spill] sm:$0xff] %v8578_v57 }
  0xd3   : > { %v8461_v25 = vpack.c.bf16 %v9693_v49, %v9691_v13 }
  0xd4   : > { %6359 = vmatpush3.bf16.xpose.msra.mxu0 %v8118_v40  ;;  %v9665_v40 = vld [vmem:[#allocation48_spill] sm:$0xff]  ;;  %9686 = vst [vmem:[#allocation32_spill] sm:$0xff] %v8444_v6 }
  0xd5   : > { %6551 = vmatpush3.bf16.xpose.msra.mxu1 %v8122_v50  ;;  %6361 = vmatprep.subr.bf16.mxu0 %v8127_v1  ;;  %v9664_v50 = vld [vmem:[#allocation42_spill] sm:$0xff]  ;;  %9694 = vst [vmem:[#allocation34_spill] sm:$0xff] %v8461_v25 }
  0xd6   : > { %6553 = vmatprep.subr.bf16.mxu1 %v8131_v30 }
  0xdc   : > { %6363 = vmatpush3.bf16.xpose.msra.mxu0 %v8127_v1  ;;  %v9663_v1 = vld [vmem:[#allocation40_spill] sm:$0xff] }
  0xdd   : > { %6555 = vmatpush3.bf16.xpose.msra.mxu1 %v8131_v30  ;;  %6365 = vmatprep.subr.bf16.mxu0 %v8135_v21  ;;  %v9652_v30 = vld [vmem:[#allocation31_spill] sm:$0xff] }
  0xde   : > { %6557 = vmatprep.subr.bf16.mxu1 %v8139_v9 }
  0xe4   : > { %6367 = vmatpush3.bf16.xpose.msra.mxu0 %v8135_v21  ;;  %v9651_v21 = vld [vmem:[#allocation12_spill] sm:$0xff] }
  0xe5   : > { %6559 = vmatpush3.bf16.xpose.msra.mxu1 %v8139_v9  ;;  %6369 = vmatprep.subr.bf16.mxu0 %v8150_v58  ;;  %v9650_v9 = vld [vmem:[#allocation11_spill] sm:$0xff] }
  0xe6   : > { %6561 = vmatprep.subr.bf16.mxu1 %v9646_v24 }
  0xec   : > { %6371 = vmatpush3.bf16.xpose.msra.mxu0 %v8150_v58  ;;  %v9655_v58 = vld [vmem:[#allocation16_spill] sm:$0xff] }
  0xed   : > { %6563 = vmatpush3.bf16.xpose.msra.mxu1 %v9646_v24  ;;  %6373 = vmatprep.subr.bf16.mxu0 %v9647_v0  ;;  %v9653_v24 = vld [vmem:[#allocation33_spill] sm:$0xff] }
  0xee   : > { %6565 = vmatprep.subr.bf16.mxu1 %v9648_v2 }
  0xf3   : > { %5341 = vmatmul.mubr.f32.vlgmr.msra.gmra.mrb[0].mxu0 %v9649_v32 }
  0xf4   : > { %6375 = vmatpush3.bf16.xpose.msra.mxu0 %v9647_v0  ;;  %5605 = vmatmul.mubr.f32.vlgmr.msra.gmra.mrb[0].mxu1 %v9649_v32  ;;  %v9654_v32 = vld [vmem:[#allocation14_spill] sm:$0xff] }
  0xf5   : > { %6567 = vmatpush3.bf16.xpose.msra.mxu1 %v9648_v2  ;;  %6377 = vmatprep.subr.bf16.mxu0 %v9650_v9 }
  0xf6   : > { %6569 = vmatprep.subr.bf16.mxu1 %v9651_v21  ;;  %5343 = vmatprep.mubr.f32.mxu0 %v9652_v30 }
  0xf7   : > { %5607 = vmatprep.mubr.f32.mxu1 %v9652_v30  ;;  %5344 = vmatmul.mubr.f32.gmra.mrb[2].mxu0 %v9653_v24  ;;  %v9656_v30 = vld [vmem:[#allocation15_spill] sm:$0xff] }
  0xf8   : > { %5608 = vmatmul.mubr.f32.gmra.mrb[2].mxu1 %v9653_v24  ;;  %5346 = vmatprep.mubr.f32.mxu0 %v7894_v37  ;;  %v9660_v24 = vld [vmem:[#allocation20_spill] sm:$0xff] }
  0xf9   : > { %5610 = vmatprep.mubr.f32.mxu1 %v7894_v37  ;;  %v9657_v37 = vld [vmem:[#allocation17_spill] sm:$0xff] }
  0xfb   : > { %5347 = vmatmul.mubr.f32.gmra.mrb[4].mxu0 %v7943_v5 }
  0xfc   : > { %6379 = vmatpush3.bf16.xpose.msra.mxu0 %v9650_v9  ;;  %5611 = vmatmul.mubr.f32.gmra.mrb[4].mxu1 %v7943_v5  ;;  %v9658_v5 = vld [vmem:[#allocation18_spill] sm:$0xff] }
  0xfd   : > { %6571 = vmatpush3.bf16.xpose.msra.mxu1 %v9651_v21  ;;  %6381 = vmatprep.subr.bf16.mxu0 %v9654_v32 }
  0xfe   : > { %6573 = vmatprep.subr.bf16.mxu1 %v9655_v58  ;;  %5349 = vmatprep.mubr.f32.mxu0 %v9624_v26 }
  0xff   : > { %5613 = vmatprep.mubr.f32.mxu1 %v9624_v26  ;;  %5350 = vmatmul.mubr.f32.gmra.mrb[6].mxu0 %v8146_v56  ;;  %v9659_v26 = vld [vmem:[#allocation19_spill] sm:$0xff] }
 0x100   : > { %5614 = vmatmul.mubr.f32.gmra.mrb[6].mxu1 %v8146_v56  ;;  %5384 = vmatprep.mubr.f32.mxu0 %v9656_v30  ;;  %v9661_v56 = vld [vmem:[#allocation24_spill] sm:$0xff] }
 0x101   : > { %5648 = vmatprep.mubr.f32.mxu1 %v9656_v30  ;;  %v9662_v30 = vld [vmem:[#allocation25_spill] sm:$0xff] }
 0x104   : > { %6383 = vmatpush3.bf16.xpose.msra.mxu0 %v9654_v32 }
 0x105   : > { %6575 = vmatpush3.bf16.xpose.msra.mxu1 %v9655_v58  ;;  %6385 = vmatprep.subr.bf16.mxu0 %v9657_v37 }
 0x106   : > { %6577 = vmatprep.subr.bf16.mxu1 %v9658_v5 }
 0x10c   : > { %6387 = vmatpush3.bf16.xpose.msra.mxu0 %v9657_v37 }
 0x10d   : > { %6579 = vmatpush3.bf16.xpose.msra.mxu1 %v9658_v5  ;;  %6389 = vmatprep.subr.bf16.mxu0 %v9659_v26 }
 0x10e   : > { %6581 = vmatprep.subr.bf16.mxu1 %v9660_v24 }
 0x114   : > { %6391 = vmatpush3.bf16.xpose.msra.mxu0 %v9659_v26 }
 0x115   : > { %6583 = vmatpush3.bf16.xpose.msra.mxu1 %v9660_v24  ;;  %6393 = vmatprep.subr.bf16.mxu0 %v9661_v56 }
 0x116   : > { %6585 = vmatprep.subr.bf16.mxu1 %v9662_v30 }
 0x11c   : > { %6395 = vmatpush3.bf16.xpose.msra.mxu0 %v9661_v56 }
 0x11d   : > { %6587 = vmatpush3.bf16.xpose.msra.mxu1 %v9662_v30  ;;  %6397 = vmatprep.subr.bf16.mxu0 %v9663_v1 }
 0x11e   : > { %6589 = vmatprep.subr.bf16.mxu1 %v9664_v50 }
 0x124   : > { %6399 = vmatpush3.bf16.xpose.msra.mxu0 %v9663_v1 }
 0x125   : > { %6591 = vmatpush3.bf16.xpose.msra.mxu1 %v9664_v50  ;;  %6401 = vmatprep.subr.bf16.mxu0 %v9665_v40 }
 0x126   : > { %6593 = vmatprep.subr.bf16.mxu1 %v9666_v16 }
 0x12c   : > { %6403 = vmatpush3.bf16.xpose.msra.mxu0 %v9665_v40 }
 0x12d   : > { %6595 = vmatpush3.bf16.xpose.msra.mxu1 %v9666_v16  ;;  %6405 = vmatprep.subr.bf16.mxu0 %v8422_v11 }
 0x12e   : > { %6597 = vmatprep.subr.bf16.mxu1 %v8428_v47 }
 0x133   : > { %5385 = vmatmul.mubr.f32.vlgmr.msra.gmra.mrb[0].mxu0 %v9687_v62 }
 0x134   : > { %6407 = vmatpush3.bf16.xpose.msra.mxu0 %v8422_v11  ;;  %5649 = vmatmul.mubr.f32.vlgmr.msra.gmra.mrb[0].mxu1 %v9687_v62  ;;  %v9696_v62 = vand.u32 4294901760, %v9695_v61 }
 0x135   : > { %6599 = vmatpush3.bf16.xpose.msra.mxu1 %v8428_v47  ;;  %6409 = vmatprep.subr.bf16.mxu0 %v8438_v60  ;;  %v9697_v47 = vld [vmem:[#allocation54_spill] sm:$0xff] }
 0x136   : > { %6601 = vmatprep.subr.bf16.mxu1 %v8444_v6  ;;  %5387 = vmatprep.mubr.f32.mxu0 %v9688_v7  ;;  %v9698_v11 = vand.u32 4294901760, %v9697_v47 }
 0x137   : > { %5651 = vmatprep.mubr.f32.mxu1 %v9688_v7  ;;  %5388 = vmatmul.mubr.f32.gmra.mrb[2].mxu0 %v9689_v29  ;;  %v9700_v7 = vld [vmem:[#allocation67_spill] sm:$0xff] }
 0x138   : > { %5652 = vmatmul.mubr.f32.gmra.mrb[2].mxu1 %v9689_v29  ;;  %5390 = vmatprep.mubr.f32.mxu0 %v9690_v45  ;;  %v8468_v14 = vpack.c.bf16 %v9698_v11, %v9696_v62  ;;  %v9702_v11 = vand.u32 4294901760, %v7990_v18  ;;  %v9704_v29 = vand.u32 4294901760, %v7997_v33  ;;  %v9708_v18 = vand.u32 4294901760, %v8012_v12 }
 0x139   : > { %5654 = vmatprep.mubr.f32.mxu1 %v9690_v45  ;;  %v9705_v45 = vand.u32 4294901760, %v8002_v39  ;;  %v9710_v33 = vand.u32 4294901760, %v8017_v53  ;;  %v9711_v39 = vand.u32 4294901760, %v8022_v54  ;;  %v9714_v12 = vand.u32 4294901760, %v8032_v4 }
 0x13a   : > { %9699 = vst [vmem:[#allocation35_spill] sm:$0xff] %v8468_v14  ;;  %v8485_v47 = vpack.c.bf16 %v9702_v11, %v9701_v34  ;;  %v9716_v53 = vand.u32 4294901760, %v8037_v8  ;;  %v9717_v54 = vand.u32 4294901760, %v8042_v10  ;;  %v9720_v4 = vand.u32 4294901760, %v8056_v51  ;;  %v8607_v11 = vld [vmem:[%s9256_s3 + $0x8] sm:$0xff] }
 0x13b   : > { %5391 = vmatmul.mubr.f32.gmra.mrb[4].mxu0 %v9700_v7  ;;  %v8492_v13 = vpack.c.bf16 %v9705_v45, %v9704_v29  ;;  %v8518_v63 = vpack.c.bf16 %v9714_v12, %v9713_v17  ;;  %v9722_v8 = vand.u32 4294901760, %v8061_v52  ;;  %v9723_v10 = vand.u32 4294901760, %v8066_v19  ;;  %9734 = vst [vmem:[#allocation29_spill] sm:$0xff] %v8607_v11  ;;  %v8632_v45 = vld [vmem:[%s9256_s3 + $0x28] sm:$0xff] }
 0x13c   : > { %6411 = vmatpush3.bf16.xpose.msra.mxu0 %v8438_v60  ;;  %5655 = vmatmul.mubr.f32.gmra.mrb[4].mxu1 %v9700_v7  ;;  %9703 = vst [vmem:[#allocation13_spill] sm:$0xff] %v8485_v47  ;;  %v8524_v49 = vpack.c.bf16 %v9717_v54, %v9716_v53  ;;  %v8534_v61 = vpack.c.bf16 %v9720_v4, %v9719_v3  ;;  %v9726_v51 = vand.u32 4294901760, %v8080_v22  ;;  %v9728_v52 = vand.u32 4294901760, %v8096_v46  ;;  %v8585_v22 = vld [vmem:[%s9256_s3] sm:$0xff] }
 0x13d   : > { %6603 = vmatpush3.bf16.xpose.msra.mxu1 %v8444_v6  ;;  %6413 = vmatprep.subr.bf16.mxu0 %v8461_v25  ;;  %9706 = vst [vmem:[#allocation9_spill] sm:$0xff] %v8492_v13  ;;  %9715 = vst [vmem:[#allocation11_spill] sm:$0xff] %v8518_v63  ;;  %v8540_v62 = vpack.c.bf16 %v9723_v10, %v9722_v8  ;;  %v9729_v19 = vand.u32 4294901760, %v8099_v20  ;;  %v7378_v46 = vmov 0   ;;  %v8600_v20 = vld [vmem:[%s9256_s3 + $0x18] sm:$0xff]  ;;  %v7379_v29 = vmov 1  }
 0x13e   : > { %6605 = vmatprep.subr.bf16.mxu1 %v8468_v14  ;;  %5393 = vmatprep.mubr.f32.mxu0 %v8175_v36  ;;  %9718 = vst [vmem:[#allocation12_spill] sm:$0xff] %v8524_v49  ;;  %9721 = vst [vmem:[#allocation31_spill] sm:$0xff] %v8534_v61  ;;  %v8550_v7 = vpack.c.bf16 %v9726_v51, %v9725_v38  ;;  %v302_v51 = vld [vmem:[%s9255_s2 + $0x50] sm:$0xff] }
 0x13f   : > { %5657 = vmatprep.mubr.f32.mxu1 %v8175_v36  ;;  %5394 = vmatmul.mubr.f32.gmra.mrb[6].mxu0 %v8181_v48  ;;  %v8502_v36 = vpack.c.bf16 %v9708_v18, %v9707_v55  ;;  %9724 = vst [vmem:[#allocation33_spill] sm:$0xff] %v8540_v62  ;;  %v8556_v34 = vpack.c.bf16 %v9729_v19, %v9728_v52  ;;  %9732 = vst [vmem:[#allocation27_spill] sm:$0xff] %v8585_v22  ;;  %v8640_v55 = vld [vmem:[%s9256_s3 + $0x30] sm:$0xff]  ;;  %v8650_v18 = vld [vmem:[%s9256_s3 + $0x38] sm:$0xff] }
 0x140   : > { %5658 = vmatmul.mubr.f32.gmra.mrb[6].mxu1 %v8181_v48  ;;  %5428 = vmatprep.mubr.f32.mxu0 %v9628_v15  ;;  %v8508_v48 = vpack.c.bf16 %v9711_v39, %v9710_v33  ;;  %9727 = vst [vmem:[#allocation15_spill] sm:$0xff] %v8550_v7  ;;  %9733 = vst [vmem:[#allocation28_spill] sm:$0xff] %v8600_v20  ;;  %v300_v33 = vld [vmem:[%s9255_s2 + $0x40] sm:$0xff]  ;;  %v310_v52 = vld [vmem:[%s9255_s2 + $0x90] sm:$0xff] }
 0x141   : > { %5692 = vmatprep.mubr.f32.mxu1 %v9628_v15  ;;  %9709 = vst [vmem:[#allocation10_spill] sm:$0xff] %v8502_v36  ;;  %9730 = vst [vmem:[#allocation19_spill] sm:$0xff] %v8556_v34  ;;  %7275 = vset.pattern.permute.xlu1 %v7378_v46  ;;  %v308_v39 = vld [vmem:[%s9255_s2 + $0x80] sm:$0xff]  ;;  %v2477_v17 = vsel %vm366_vm0, %v300_v33, 0 }
 0x142   : > { %9712 = vst [vmem:[#allocation30_spill] sm:$0xff] %v8508_v48  ;;  %7274 = vset.pattern.permute.xlu0 %v7378_v46  ;;  %338 = vperm.xlu1 %7275, %v8578_v57   ;;  %9736 = vst [vmem:[#allocation38_spill] sm:$0xff] %v8632_v45  ;;  %v3443_v12 = vsel %vm366_vm0, %v308_v39, 0  ;;  %v8675_v53 = vand.u32 4294901760, %v2477_v17  ;;  %v304_v39 = vld [vmem:[%s9255_s2 + $0x60] sm:$0xff] }
 0x143   : > { %328 = vperm.xlu0 %7274, %v8585_v22   ;;  %9737 = vst [vmem:[#allocation39_spill] sm:$0xff] %v8640_v55  ;;  %9738 = vst [vmem:[#allocation41_spill] sm:$0xff] %v8650_v18  ;;  %v8679_v54 = vand.u32 4294901760, %v3443_v12 }
 0x144   : > { %6415 = vmatpush3.bf16.xpose.msra.mxu0 %v8461_v25  ;;  %v8683_v3 = vsub.f32 %v2477_v17, %v8675_v53  ;;  %v2483_v17 = vsel %vm366_vm0, %v302_v51, 0 }
 0x145   : > { %6607 = vmatpush3.bf16.xpose.msra.mxu1 %v8468_v14  ;;  %6417 = vmatprep.subr.bf16.mxu0 %v8485_v47  ;;  %v8686_v4 = vsub.f32 %v3443_v12, %v8679_v54  ;;  %v3449_v12 = vsel %vm366_vm0, %v310_v52, 0  ;;  %v8778_v52 = vand.u32 4294901760, %v2483_v17 }
 0x146   : > { %6609 = vmatprep.subr.bf16.mxu1 %v8492_v13  ;;  %343 = vperm.xlu1 %7275, %v8600_v20   ;;  %v9441_v8 = vand.u32 4294901760, %v8683_v3 }
 0x147   : > { %333 = vperm.xlu0 %7274, %v8607_v11   ;;  %v9440_v10 = vand.u32 4294901760, %v8686_v4 }
 0x14a   : > { %7277 = vset.pattern.permute.xlu1 %v7379_v29 }
 0x14b   : > { %2392 = vperm.xlu1 %7277, %v8607_v11   ;;  %7276 = vset.pattern.permute.xlu0 %v7379_v29 }
 0x14c   : > { %6419 = vmatpush3.bf16.xpose.msra.mxu0 %v8485_v47  ;;  %2388 = vperm.xlu0 %7276, %v8585_v22  }
 0x14d   : > { %6611 = vmatpush3.bf16.xpose.msra.mxu1 %v8492_v13  ;;  %6421 = vmatprep.subr.bf16.mxu0 %v8502_v36 }
 0x14e   : > { %6613 = vmatprep.subr.bf16.mxu1 %v8508_v48 }
 0x14f   : > { %7278 = vset.pattern.permute.xlu1 %v7378_v46  ;;  %v303_v46 = vld [vmem:[%s9255_s2 + $0x58] sm:$0xff] }
 0x150   : > { %2396 = vperm.xlu0 %7276, %v8578_v57  }
 0x154   : > { %6423 = vmatpush3.bf16.xpose.msra.mxu0 %v8502_v36  ;;  %2400 = vperm.xlu0 %7276, %v8600_v20  }
 0x155   : > { %6615 = vmatpush3.bf16.xpose.msra.mxu1 %v8508_v48  ;;  %6425 = vmatprep.subr.bf16.mxu0 %v8518_v63 }
 0x156   : > { %6617 = vmatprep.subr.bf16.mxu1 %v8524_v49 }
 0x15c   : > { %6427 = vmatpush3.bf16.xpose.msra.mxu0 %v8518_v63 }
 0x15d   : > { %6619 = vmatpush3.bf16.xpose.msra.mxu1 %v8524_v49  ;;  %6429 = vmatprep.subr.bf16.mxu0 %v8534_v61 }
 0x15e   : > { %6621 = vmatprep.subr.bf16.mxu1 %v8540_v62 }
 0x164   : > { %6431 = vmatpush3.bf16.xpose.msra.mxu0 %v8534_v61 }
 0x165   : > { %6623 = vmatpush3.bf16.xpose.msra.mxu1 %v8540_v62  ;;  %6433 = vmatprep.subr.bf16.mxu0 %v8550_v7  ;;  %v314_v62 = vld [vmem:[%s9255_s2 + $0xb0] sm:$0xff] }
 0x166   : > { %6625 = vmatprep.subr.bf16.mxu1 %v8556_v34 }
 0x16c   : > { %6435 = vmatpush3.bf16.xpose.msra.mxu0 %v8550_v7 }
 0x16d   : > { %6627 = vmatpush3.bf16.xpose.msra.mxu1 %v8556_v34  ;;  %6437 = vmatprep.subr.bf16.mxu0 %v9647_v0  ;;  %v306_v34 = vld [vmem:[%s9255_s2 + $0x70] sm:$0xff] }
 0x16e   : > { %6629 = vmatprep.subr.bf16.mxu1 %v9648_v2  ;;  %v2495_v61 = vsel %vm366_vm0, %v306_v34, 0 }
 0x173   : > { %5429 = vmatmul.mubr.f32.vlgmr.msra.gmra.mrb[0].mxu0 %v9639_v44 }
 0x174   : > { %6439 = vmatpush3.bf16.xpose.msra.mxu0 %v9647_v0  ;;  %5693 = vmatmul.mubr.f32.vlgmr.msra.gmra.mrb[0].mxu1 %v9639_v44 }
 0x175   : > { %6631 = vmatpush3.bf16.xpose.msra.mxu1 %v9648_v2  ;;  %6441 = vmatprep.subr.bf16.mxu0 %v9650_v9 }
 0x176   : > { %6633 = vmatprep.subr.bf16.mxu1 %v9651_v21  ;;  %5431 = vmatprep.mubr.f32.mxu0 %v9640_v41 }
 0x177   : > { %5695 = vmatprep.mubr.f32.mxu1 %v9640_v41  ;;  %5432 = vmatmul.mubr.f32.gmra.mrb[2].mxu0 %v9641_v28 }
 0x178   : > { %5696 = vmatmul.mubr.f32.gmra.mrb[2].mxu1 %v9641_v28  ;;  %5434 = vmatprep.mubr.f32.mxu0 %v9642_v35 }
 0x179   : > { %5698 = vmatprep.mubr.f32.mxu1 %v9642_v35 }
 0x17b   : > { %5435 = vmatmul.mubr.f32.gmra.mrb[4].mxu0 %v9643_v42 }
 0x17c   : > { %6443 = vmatpush3.bf16.xpose.msra.mxu0 %v9650_v9  ;;  %5699 = vmatmul.mubr.f32.gmra.mrb[4].mxu1 %v9643_v42 }
 0x17d   : > { %6635 = vmatpush3.bf16.xpose.msra.mxu1 %v9651_v21  ;;  %6445 = vmatprep.subr.bf16.mxu0 %v9654_v32 }
 0x17e   : > { %6637 = vmatprep.subr.bf16.mxu1 %v9655_v58  ;;  %5437 = vmatprep.mubr.f32.mxu0 %v9644_v27 }
 0x17f   : > { %5701 = vmatprep.mubr.f32.mxu1 %v9644_v27  ;;  %5438 = vmatmul.mubr.f32.gmra.mrb[6].mxu0 %v7960_v43 }
 0x180   : > { %5702 = vmatmul.mubr.f32.gmra.mrb[6].mxu1 %v7960_v43  ;;  %5472 = vmatprep.mubr.f32.mxu0 %v9628_v15 }
 0x181   : > { %5736 = vmatprep.mubr.f32.mxu1 %v9628_v15  ;;  %v8623_v15 = vld [vmem:[%s9256_s3 + $0x20] sm:$0xff] }
 0x182   : > { %9735 = vst [vmem:[#allocation36_spill] sm:$0xff] %v8623_v15  ;;  %348 = vperm.xlu1 %7278, %v8623_v15   ;;  %2404 = vperm.xlu0 %7276, %v8623_v15  }
 0x184   : > { %6447 = vmatpush3.bf16.xpose.msra.mxu0 %v9654_v32 }
 0x185   : > { %6639 = vmatpush3.bf16.xpose.msra.mxu1 %v9655_v58  ;;  %6449 = vmatprep.subr.bf16.mxu0 %v9657_v37 }
 0x186   : > { %6641 = vmatprep.subr.bf16.mxu1 %v9658_v5  ;;  %353 = vperm.xlu1 %7278, %v8632_v45  }
 0x187   : > { %2408 = vperm.xlu0 %7276, %v8632_v45  }
 0x18a   : > { %358 = vperm.xlu1 %7278, %v8640_v55  }
 0x18b   : > { %2416 = vperm.xlu0 %7276, %v8650_v18  }
 0x18c   : > { %6451 = vmatpush3.bf16.xpose.msra.mxu0 %v9657_v37 }
 0x18d   : > { %6643 = vmatpush3.bf16.xpose.msra.mxu1 %v9658_v5  ;;  %6453 = vmatprep.subr.bf16.mxu0 %v9659_v26 }
 0x18e   : > { %6645 = vmatprep.subr.bf16.mxu1 %v9660_v24  ;;  %363 = vperm.xlu1 %7278, %v8650_v18  }
 0x192   : > { %7279 = vset.pattern.permute.xlu1 %v7379_v29  ;;  %v311_v29 = vld [vmem:[%s9255_s2 + $0x98] sm:$0xff] }
 0x193   : > { %2412 = vperm.xlu1 %7279, %v8640_v55   ;;  %v8812_v55 = vsub.f32 %v2483_v17, %v8778_v52 }
 0x194   : > { %6455 = vmatpush3.bf16.xpose.msra.mxu0 %v9659_v26 }
 0x195   : > { %6647 = vmatpush3.bf16.xpose.msra.mxu1 %v9660_v24  ;;  %6457 = vmatprep.subr.bf16.mxu0 %v9661_v56  ;;  %v9749_v14 = vand.u32 4294901760, %v8812_v55 }
 0x196   : > { %6649 = vmatprep.subr.bf16.mxu1 %v9662_v30 }
 0x19c   : > { %6459 = vmatpush3.bf16.xpose.msra.mxu0 %v9661_v56 }
 0x19d   : > { %6651 = vmatpush3.bf16.xpose.msra.mxu1 %v9662_v30  ;;  %6461 = vmatprep.subr.bf16.mxu0 %v9663_v1 }
 0x19e   : > { %6653 = vmatprep.subr.bf16.mxu1 %v9664_v50 }
 0x1a4   : > { %6463 = vmatpush3.bf16.xpose.msra.mxu0 %v9663_v1 }
 0x1a5   : > { %6655 = vmatpush3.bf16.xpose.msra.mxu1 %v9664_v50  ;;  %6465 = vmatprep.subr.bf16.mxu0 %v9665_v40 }
 0x1a6   : > { %6657 = vmatprep.subr.bf16.mxu1 %v9666_v16 }
 0x1ac   : > { %6467 = vmatpush3.bf16.xpose.msra.mxu0 %v9665_v40 }
 0x1ad   : > { %6659 = vmatpush3.bf16.xpose.msra.mxu1 %v9666_v16  ;;  %6661 = vmatprep.subr.bf16.mxu0 %v9647_v0 }
 0x1ae   : > { %6853 = vmatprep.subr.bf16.mxu1 %v9648_v2 }
 0x1b3   : > { %5473 = vmatmul.mubr.f32.vlgmr.msra.gmra.mrb[0].mxu0 %v9639_v44 }
 0x1b4   : > { %5737 = vmatmul.mubr.f32.vlgmr.msra.gmra.mrb[0].mxu1 %v9639_v44  ;;  %6663 = vmatpush3.bf16.xpose.msra.mxu0 %v9647_v0  ;;  %v2584_v44 = vsub.f32 %v8683_v3, %v9441_v8 }
 0x1b5   : > { %6855 = vmatpush3.bf16.xpose.msra.mxu1 %v9648_v2  ;;  %5475 = vmatprep.mubr.f32.mxu0 %v9640_v41 }
 0x1b6   : > { %5739 = vmatprep.mubr.f32.mxu1 %v9640_v41  ;;  %6665 = vmatprep.subr.bf16.mxu0 %v9650_v9  ;;  %v3550_v41 = vsub.f32 %v8686_v4, %v9440_v10  ;;  %v2585_v38 = vand.u32 4294901760, %v2584_v44  ;;  %v312_v44 = vld [vmem:[%s9255_s2 + $0xa0] sm:$0xff]  ;;  %v8780_v10 = vand.u32 4294901760, %v3449_v12 }
 0x1b7   : > { %5476 = vmatmul.mubr.f32.gmra.mrb[2].mxu0 %v9641_v28  ;;  %6857 = vmatprep.subr.bf16.mxu1 %v9651_v21 }
 0x1b8   : > { %5740 = vmatmul.mubr.f32.gmra.mrb[2].mxu1 %v9641_v28  ;;  %5478 = vmatprep.mubr.f32.mxu0 %v9642_v35  ;;  %v3551_v28 = vand.u32 4294901760, %v3550_v41  ;;  %v2486_v41 = vsel %vm366_vm0, %v303_v46, 0  ;;  %v3455_v46 = vsel %vm366_vm0, %v312_v44, 0  ;;  %v8815_v44 = vsub.f32 %v3449_v12, %v8780_v10 }
 0x1b9   : > { %5742 = vmatprep.mubr.f32.mxu1 %v9642_v35  ;;  %v309_v35 = vld [vmem:[%s9255_s2 + $0x88] sm:$0xff]  ;;  %v8800_v7 = vand.u32 4294901760, %v3455_v46  ;;  %v3461_v12 = vsel %vm366_vm0, %v314_v62, 0  ;;  %v8848_v62 = vand.u32 4294901760, %v2495_v61 }
 0x1bb   : > { %5479 = vmatmul.mubr.f32.gmra.mrb[4].mxu0 %v9643_v42  ;;  %9739 = vst [vmem:[#allocation37_spill] sm:$0xff] %v8800_v7  ;;  %9744 = vst [vmem:[#allocation52_spill] sm:$0xff] %v8848_v62  ;;  %v8877_v25 = vsub.f32 %v2495_v61, %v8848_v62 }
 0x1bc   : > { %5743 = vmatmul.mubr.f32.gmra.mrb[4].mxu1 %v9643_v42  ;;  %6667 = vmatpush3.bf16.xpose.msra.mxu0 %v9650_v9 }
 0x1bd   : > { %6859 = vmatpush3.bf16.xpose.msra.mxu1 %v9651_v21  ;;  %5481 = vmatprep.mubr.f32.mxu0 %v9644_v27 }
 0x1be   : > { %5745 = vmatprep.mubr.f32.mxu1 %v9644_v27  ;;  %6669 = vmatprep.subr.bf16.mxu0 %v9654_v32  ;;  %v3446_v27 = vsel %vm366_vm0, %v309_v35, 0  ;;  %v305_v35 = vld [vmem:[%s9255_s2 + $0x68] sm:$0xff] }
 0x1bf   : > { %5482 = vmatmul.mubr.f32.gmra.mrb[6].mxu0 %v7960_v43  ;;  %6861 = vmatprep.subr.bf16.mxu1 %v9655_v58  ;;  %v8756_v33 = vand.u32 4294901760, %v3446_v27 }
 0x1c0   : > { %5746 = vmatmul.mubr.f32.gmra.mrb[6].mxu1 %v7960_v43  ;;  %5780 = vmatprep.mubr.f32.mxu0 %v2585_v38  ;;  %v301_v43 = vld [vmem:[%s9255_s2 + $0x48] sm:$0xff]  ;;  %v3452_v38 = vsel %vm366_vm0, %v311_v29, 0  ;;  %v8786_v29 = vand.u32 4294901760, %v2486_v41 }
 0x1c1   : > { %6044 = vmatprep.mubr.f32.mxu1 %v3551_v28  ;;  %v2480_v42 = vsel %vm366_vm0, %v301_v43, 0  ;;  %v2489_v43 = vsel %vm366_vm0, %v304_v39, 0  ;;  %v8776_v51 = vsub.f32 %v3446_v27, %v8756_v33  ;;  %v8788_v39 = vand.u32 4294901760, %v3452_v38 }
 0x1c2   : > { %v8747_v19 = vand.u32 4294901760, %v2480_v42  ;;  %v8791_v8 = vand.u32 4294901760, %v2489_v43  ;;  %v2492_v27 = vsel %vm366_vm0, %v305_v35, 0  ;;  %v307_v35 = vld [vmem:[%s9255_s2 + $0x78] sm:$0xff]  ;;  %v8821_v45 = vsub.f32 %v2486_v41, %v8786_v29 }
 0x1c3   : > { %v8824_v49 = vsub.f32 %v3452_v38, %v8788_v39  ;;  %v8826_v63 = vand.u32 4294901760, %v2492_v27  ;;  %v2498_v48 = vsel %vm366_vm0, %v307_v35, 0  ;;  %v8840_v38 = vsub.f32 %v3455_v46, %v8800_v7  ;;  %v9748_v35 = vld [vmem:[#allocation53_spill] sm:$0xff] }
 0x1c4   : > { %6671 = vmatpush3.bf16.xpose.msra.mxu0 %v9654_v32  ;;  %v8769_v28 = vsub.f32 %v2480_v42, %v8747_v19  ;;  %v313_v42 = vld [vmem:[%s9255_s2 + $0xa8] sm:$0xff]  ;;  %v8830_v17 = vsub.f32 %v2489_v43, %v8791_v8  ;;  %v9743_v34 = vand.u32 4294901760, %v8776_v51  ;;  %v8856_v46 = vand.u32 4294901760, %v2498_v48 }
 0x1c5   : > { %6863 = vmatpush3.bf16.xpose.msra.mxu1 %v9655_v58  ;;  %6673 = vmatprep.subr.bf16.mxu0 %v9657_v37  ;;  %v3458_v18 = vsel %vm366_vm0, %v313_v42, 0  ;;  %v315_v42 = vld [vmem:[%s9255_s2 + $0xb8] sm:$0xff]  ;;  %9740 = vst [vmem:[#allocation45_spill] sm:$0xff] %v8826_v63  ;;  %v8852_v47 = vsub.f32 %v2492_v27, %v8826_v63  ;;  %v9751_v6 = vand.u32 4294901760, %v8821_v45  ;;  %v9754_v11 = vand.u32 4294901760, %v8840_v38 }
 0x1c6   : > { %6865 = vmatprep.subr.bf16.mxu1 %v9658_v5  ;;  %v8832_v15 = vand.u32 4294901760, %v3458_v18  ;;  %v9742_v36 = vand.u32 4294901760, %v8769_v28  ;;  %v3464_v20 = vsel %vm366_vm0, %v315_v42, 0  ;;  %v3560_v43 = vsub.f32 %v8776_v51, %v9743_v34  ;;  %9746 = vst [vmem:[#allocation51_spill] sm:$0xff] %v8856_v46 }
 0x1c7   : > { %v8864_v13 = vand.u32 4294901760, %v3464_v20  ;;  %v2604_v42 = vsub.f32 %v8812_v55, %v9749_v14  ;;  %v9750_v34 = vand.u32 4294901760, %v8815_v44  ;;  %v9752_v14 = vand.u32 4294901760, %v8824_v49 }
 0x1c8   : > { %9741 = vst [vmem:[#allocation46_spill] sm:$0xff] %v8832_v15  ;;  %v2594_v41 = vsub.f32 %v8769_v28, %v9742_v36  ;;  %v8854_v36 = vand.u32 4294901760, %v3461_v12  ;;  %v8862_v57 = vsub.f32 %v3458_v18, %v8832_v15  ;;  %v3561_v22 = vand.u32 4294901760, %v3560_v43 }
 0x1c9   : > { %9747 = vst [vmem:[#allocation54_spill] sm:$0xff] %v8864_v13  ;;  %v3570_v18 = vsub.f32 %v8815_v44, %v9750_v34  ;;  %v8887_v43 = vsub.f32 %v2498_v48, %v8856_v46  ;;  %v9753_v34 = vand.u32 4294901760, %v8830_v17 }
 0x1ca   : > { %9745 = vst [vmem:[#allocation47_spill] sm:$0xff] %v8854_v36  ;;  %v2595_v27 = vand.u32 4294901760, %v2594_v41  ;;  %v2614_v41 = vsub.f32 %v8821_v45, %v9751_v6  ;;  %v8884_v60 = vsub.f32 %v3461_v12, %v8854_v36  ;;  %v8897_v6 = vsub.f32 %v3464_v20, %v8864_v13 }
 0x1cb   : > { %v2624_v61 = vsub.f32 %v8830_v17, %v9753_v34  ;;  %v3590_v12 = vsub.f32 %v8840_v38, %v9754_v11  ;;  %v3571_v48 = vand.u32 4294901760, %v3570_v18  ;;  %v9756_v11 = vand.u32 4294901760, %v8862_v57 }
 0x1cc   : > { %6675 = vmatpush3.bf16.xpose.msra.mxu0 %v9657_v37  ;;  %v9495_v34 = vand.u32 4294901760, %v8884_v60 }
 0x1cd   : > { %6867 = vmatpush3.bf16.xpose.msra.mxu1 %v9658_v5  ;;  %6677 = vmatprep.subr.bf16.mxu0 %v9659_v26  ;;  %v3591_v18 = vand.u32 4294901760, %v3590_v12 }
 0x1ce   : > { %6869 = vmatprep.subr.bf16.mxu1 %v9660_v24 }
 0x1d4   : > { %6679 = vmatpush3.bf16.xpose.msra.mxu0 %v9659_v26 }
 0x1d5   : > { %6871 = vmatpush3.bf16.xpose.msra.mxu1 %v9660_v24  ;;  %6681 = vmatprep.subr.bf16.mxu0 %v9661_v56  ;;  %v2625_v24 = vand.u32 4294901760, %v2624_v61 }
 0x1d6   : > { %6873 = vmatprep.subr.bf16.mxu1 %v9662_v30 }
 0x1dc   : > { %6683 = vmatpush3.bf16.xpose.msra.mxu0 %v9661_v56 }
 0x1dd   : > { %6875 = vmatpush3.bf16.xpose.msra.mxu1 %v9662_v30  ;;  %6685 = vmatprep.subr.bf16.mxu0 %v9663_v1  ;;  %v2615_v30 = vand.u32 4294901760, %v2614_v41 }
 0x1de   : > { %6877 = vmatprep.subr.bf16.mxu1 %v9664_v50 }
 0x1e4   : > { %6687 = vmatpush3.bf16.xpose.msra.mxu0 %v9663_v1  ;;  %v9496_v1 = vand.u32 4294901760, %v8877_v25 }
 0x1e5   : > { %6879 = vmatpush3.bf16.xpose.msra.mxu1 %v9664_v50  ;;  %6689 = vmatprep.subr.bf16.mxu0 %v9665_v40  ;;  %v2605_v50 = vand.u32 4294901760, %v2604_v42  ;;  %v3600_v42 = vsub.f32 %v8862_v57, %v9756_v11  ;;  %v9763_v11 = vld [vmem:[#allocation74_spill] sm:$0xff] }
 0x1e6   : > { %6881 = vmatprep.subr.bf16.mxu1 %v9666_v16 }
 0x1e7   : > { %v3601_v41 = vand.u32 4294901760, %v3600_v42  ;;  %v9764_v42 = vld [vmem:[#allocation75_spill] sm:$0xff] }
 0x1ec   : > { %6691 = vmatpush3.bf16.xpose.msra.mxu0 %v9665_v40  ;;  %v9494_v40 = vand.u32 4294901760, %v8887_v43 }
 0x1ed   : > { %6883 = vmatpush3.bf16.xpose.msra.mxu1 %v9666_v16  ;;  %6693 = vmatprep.subr.bf16.mxu0 %v9748_v35  ;;  %v3580_v16 = vsub.f32 %v8824_v49, %v9752_v14  ;;  %v9755_v14 = vand.u32 4294901760, %v8852_v47 }
 0x1ee   : > { %6885 = vmatprep.subr.bf16.mxu1 %v7964_v31 }
 0x1ef   : > { %v2634_v56 = vsub.f32 %v8852_v47, %v9755_v14  ;;  %v3581_v20 = vand.u32 4294901760, %v3580_v16  ;;  %v9758_v14 = vld [vmem:[#allocation70_spill] sm:$0xff] }
 0x1f1   : > { %v2635_v16 = vand.u32 4294901760, %v2634_v56 }
 0x1f3   : > { %5781 = vmatmul.mubr.f32.vlgmr.msra.gmra.mrb[8].mxu0 %v2595_v27  ;;  %v9493_v27 = vand.u32 4294901760, %v8897_v6 }
 0x1f4   : > { %6695 = vmatpush3.bf16.xpose.msra.mxu0 %v9748_v35  ;;  %6045 = vmatmul.mubr.f32.vlgmr.msra.gmra.mrb[8].mxu1 %v3561_v22  ;;  %v2644_v22 = vsub.f32 %v8877_v25, %v9496_v1  ;;  %v3610_v35 = vsub.f32 %v8884_v60, %v9495_v34 }
 0x1f5   : > { %6887 = vmatpush3.bf16.xpose.msra.mxu1 %v7964_v31  ;;  %6697 = vmatprep.subr.bf16.mxu0 %v8158_v59  ;;  %v2654_v31 = vsub.f32 %v8887_v43, %v9494_v40 }
 0x1f6   : > { %6889 = vmatprep.subr.bf16.mxu1 %v8160_v23  ;;  %5783 = vmatprep.mubr.f32.mxu0 %v2605_v50  ;;  %v3620_v50 = vsub.f32 %v8897_v6, %v9493_v27  ;;  %v2645_v61 = vand.u32 4294901760, %v2644_v22  ;;  %v9766_v22 = vld [vmem:[#allocation77_spill] sm:$0xff] }
 0x1f7   : > { %6047 = vmatprep.mubr.f32.mxu1 %v3571_v48  ;;  %5784 = vmatmul.mubr.f32.gmra.mrb[10].mxu0 %v2615_v30  ;;  %v3611_v30 = vand.u32 4294901760, %v3610_v35  ;;  %v2655_v56 = vand.u32 4294901760, %v2654_v31  ;;  %v9757_v48 = vld [vmem:[#allocation49_spill] sm:$0xff]  ;;  %v9768_v35 = vld [vmem:[#allocation79_spill] sm:$0xff] }
 0x1f8   : > { %6048 = vmatmul.mubr.f32.gmra.mrb[10].mxu1 %v3581_v20  ;;  %5786 = vmatprep.mubr.f32.mxu0 %v2625_v24  ;;  %v3621_v12 = vand.u32 4294901760, %v3620_v50  ;;  %v9760_v24 = vld [vmem:[#allocation71_spill] sm:$0xff]  ;;  %v9762_v20 = vld [vmem:[#allocation73_spill] sm:$0xff] }
 0x1f9   : > { %6050 = vmatprep.mubr.f32.mxu1 %v3591_v18  ;;  %v9765_v18 = vld [vmem:[#allocation76_spill] sm:$0xff]  ;;  %v9769_v31 = vld [vmem:[#allocation55_spill] sm:$0xff]  ;;  %v9771_v50 = vld [vmem:[#allocation57_spill] sm:$0xff] }
 0x1fb   : > { %5787 = vmatmul.mubr.f32.gmra.mrb[12].mxu0 %v2635_v16  ;;  %v9767_v16 = vld [vmem:[#allocation78_spill] sm:$0xff] }
 0x1fc   : > { %6699 = vmatpush3.bf16.xpose.msra.mxu0 %v8158_v59  ;;  %6051 = vmatmul.mubr.f32.gmra.mrb[12].mxu1 %v3601_v41  ;;  %v9759_v59 = vld [vmem:[#allocation8_spill] sm:$0xff] }
 0x1fd   : > { %6891 = vmatpush3.bf16.xpose.msra.mxu1 %v8160_v23  ;;  %6701 = vmatprep.subr.bf16.mxu0 %v9757_v48  ;;  %v9761_v23 = vld [vmem:[#allocation72_spill] sm:$0xff] }
 0x1fe   : > { %6893 = vmatprep.subr.bf16.mxu1 %v9758_v14  ;;  %5789 = vmatprep.mubr.f32.mxu0 %v2645_v61  ;;  %v9770_v41 = vld [vmem:[#allocation56_spill] sm:$0xff]  ;;  %v9772_v61 = vld [vmem:[#allocation58_spill] sm:$0xff] }
 0x1ff   : > { %6053 = vmatprep.mubr.f32.mxu1 %v3611_v30  ;;  %5790 = vmatmul.mubr.f32.gmra.mrb[14].mxu0 %v2655_v56  ;;  %v9773_v30 = vld [vmem:[#allocation59_spill] sm:$0xff] }
 0x200   : > { %6054 = vmatmul.mubr.f32.gmra.mrb[14].mxu1 %v3621_v12  ;;  %5824 = vmatprep.mubr.f32.mxu0 %v8675_v53  ;;  %v9774_v56 = vld [vmem:[#allocation43_spill] sm:$0xff]  ;;  %v9775_v12 = vld [vmem:[#allocation44_spill] sm:$0xff] }
 0x201   : > { %6088 = vmatprep.mubr.f32.mxu1 %v8679_v54 }
 0x204   : > { %6703 = vmatpush3.bf16.xpose.msra.mxu0 %v9757_v48  ;;  %v9776_v48 = vld [vmem:[#allocation60_spill] sm:$0xff] }
 0x205   : > { %6895 = vmatpush3.bf16.xpose.msra.mxu1 %v9758_v14  ;;  %6705 = vmatprep.subr.bf16.mxu0 %v9759_v59  ;;  %v9777_v14 = vld [vmem:[#allocation61_spill] sm:$0xff] }
 0x206   : > { %6897 = vmatprep.subr.bf16.mxu1 %v9760_v24 }
 0x20c   : > { %6707 = vmatpush3.bf16.xpose.msra.mxu0 %v9759_v59  ;;  %v9778_v59 = vld [vmem:[#allocation62_spill] sm:$0xff] }
 0x20d   : > { %6899 = vmatpush3.bf16.xpose.msra.mxu1 %v9760_v24  ;;  %6709 = vmatprep.subr.bf16.mxu0 %v9761_v23  ;;  %v9779_v24 = vld [vmem:[#allocation63_spill] sm:$0xff] }
 0x20e   : > { %6901 = vmatprep.subr.bf16.mxu1 %v9762_v20 }
 0x214   : > { %6711 = vmatpush3.bf16.xpose.msra.mxu0 %v9761_v23  ;;  %v9780_v23 = vld [vmem:[#allocation64_spill] sm:$0xff] }
 0x215   : > { %6903 = vmatpush3.bf16.xpose.msra.mxu1 %v9762_v20  ;;  %6713 = vmatprep.subr.bf16.mxu0 %v9763_v11  ;;  %v9781_v20 = vld [vmem:[#allocation65_spill] sm:$0xff] }
 0x216   : > { %6905 = vmatprep.subr.bf16.mxu1 %v9764_v42 }
 0x21c   : > { %6715 = vmatpush3.bf16.xpose.msra.mxu0 %v9763_v11  ;;  %v9782_v11 = vld [vmem:[#allocation66_spill] sm:$0xff] }
 0x21d   : > { %6907 = vmatpush3.bf16.xpose.msra.mxu1 %v9764_v42  ;;  %6717 = vmatprep.subr.bf16.mxu0 %v9765_v18  ;;  %v9783_v42 = vld [vmem:[#allocation68_spill] sm:$0xff] }
 0x21e   : > { %6909 = vmatprep.subr.bf16.mxu1 %v9766_v22 }
 0x224   : > { %6719 = vmatpush3.bf16.xpose.msra.mxu0 %v9765_v18  ;;  %v9784_v18 = vld [vmem:[#allocation69_spill] sm:$0xff] }
 0x225   : > { %6911 = vmatpush3.bf16.xpose.msra.mxu1 %v9766_v22  ;;  %6721 = vmatprep.subr.bf16.mxu0 %v9767_v16  ;;  %v9003_v22 = vpop.permute.xlu1 %338 }
 0x226   : > { %6913 = vmatprep.subr.bf16.mxu1 %v9768_v35 }
 0x22c   : > { %6723 = vmatpush3.bf16.xpose.msra.mxu0 %v9767_v16  ;;  %v329_v16 = vpop.permute.xlu0 %328 }
 0x22d   : > { %6915 = vmatpush3.bf16.xpose.msra.mxu1 %v9768_v35  ;;  %6725 = vmatprep.subr.bf16.mxu0 %v9769_v31  ;;  %v344_v35 = vpop.permute.xlu1 %343 }
 0x22e   : > { %6917 = vmatprep.subr.bf16.mxu1 %v9770_v41 }
 0x233   : > { %5825 = vmatmul.mubr.f32.vlgmr.msra.gmra.mrb[8].mxu0 %v8747_v19 }
 0x234   : > { %6727 = vmatpush3.bf16.xpose.msra.mxu0 %v9769_v31  ;;  %6089 = vmatmul.mubr.f32.vlgmr.msra.gmra.mrb[8].mxu1 %v8756_v33  ;;  %v334_v31 = vpop.permute.xlu0 %333 }
 0x235   : > { %6919 = vmatpush3.bf16.xpose.msra.mxu1 %v9770_v41  ;;  %6729 = vmatprep.subr.bf16.mxu0 %v9771_v50  ;;  %v2393_v41 = vpop.permute.xlu1 %2392 }
 0x236   : > { %6921 = vmatprep.subr.bf16.mxu1 %v9772_v61  ;;  %5827 = vmatprep.mubr.f32.mxu0 %v8778_v52 }
 0x237   : > { %6091 = vmatprep.mubr.f32.mxu1 %v8780_v10  ;;  %5828 = vmatmul.mubr.f32.gmra.mrb[10].mxu0 %v8786_v29 }
 0x238   : > { %6092 = vmatmul.mubr.f32.gmra.mrb[10].mxu1 %v8788_v39  ;;  %5830 = vmatprep.mubr.f32.mxu0 %v8791_v8 }
 0x239   : > { %6094 = vmatprep.mubr.f32.mxu1 %v8800_v7 }
 0x23b   : > { %5831 = vmatmul.mubr.f32.gmra.mrb[12].mxu0 %v8826_v63 }
 0x23c   : > { %6731 = vmatpush3.bf16.xpose.msra.mxu0 %v9771_v50  ;;  %6095 = vmatmul.mubr.f32.gmra.mrb[12].mxu1 %v8832_v15  ;;  %v2389_v50 = vpop.permute.xlu0 %2388 }
 0x23d   : > { %6923 = vmatpush3.bf16.xpose.msra.mxu1 %v9772_v61  ;;  %6733 = vmatprep.subr.bf16.mxu0 %v9773_v30  ;;  %v349_v61 = vpop.permute.xlu1 %348 }
 0x23e   : > { %6925 = vmatprep.subr.bf16.mxu1 %v9774_v56  ;;  %5833 = vmatprep.mubr.f32.mxu0 %v8848_v62 }
 0x23f   : > { %6097 = vmatprep.mubr.f32.mxu1 %v8854_v36  ;;  %5834 = vmatmul.mubr.f32.gmra.mrb[14].mxu0 %v8856_v46 }
 0x240   : > { %6098 = vmatmul.mubr.f32.gmra.mrb[14].mxu1 %v8864_v13  ;;  %5868 = vmatprep.mubr.f32.mxu0 %v8683_v3 }
 0x241   : > { %6132 = vmatprep.mubr.f32.mxu1 %v8686_v4 }
 0x244   : > { %6735 = vmatpush3.bf16.xpose.msra.mxu0 %v9773_v30  ;;  %v2397_v30 = vpop.permute.xlu0 %2396 }
 0x245   : > { %6927 = vmatpush3.bf16.xpose.msra.mxu1 %v9774_v56  ;;  %6737 = vmatprep.subr.bf16.mxu0 %v9775_v12  ;;  %v9785_v56 = vand.u32 4294901760, %v8683_v3 }
 0x246   : > { %6929 = vmatprep.subr.bf16.mxu1 %v9776_v48 }
 0x24c   : > { %6739 = vmatpush3.bf16.xpose.msra.mxu0 %v9775_v12  ;;  %v9786_v12 = vand.u32 4294901760, %v8686_v4 }
 0x24d   : > { %6931 = vmatpush3.bf16.xpose.msra.mxu1 %v9776_v48  ;;  %6741 = vmatprep.subr.bf16.mxu0 %v9777_v14  ;;  %v354_v48 = vpop.permute.xlu1 %353 }
 0x24e   : > { %6933 = vmatprep.subr.bf16.mxu1 %v9778_v59 }
 0x251   : > { %v359_v40 = vpop.permute.xlu1 %358 }
 0x254   : > { %6743 = vmatpush3.bf16.xpose.msra.mxu0 %v9777_v14 }
 0x255   : > { %6935 = vmatpush3.bf16.xpose.msra.mxu1 %v9778_v59  ;;  %6745 = vmatprep.subr.bf16.mxu0 %v9779_v24  ;;  %v2401_v59 = vpop.permute.xlu0 %2400 }
 0x256   : > { %6937 = vmatprep.subr.bf16.mxu1 %v9780_v23 }
 0x25c   : > { %6747 = vmatpush3.bf16.xpose.msra.mxu0 %v9779_v24 }
 0x25d   : > { %6939 = vmatpush3.bf16.xpose.msra.mxu1 %v9780_v23  ;;  %6749 = vmatprep.subr.bf16.mxu0 %v9781_v20 }
 0x25e   : > { %6941 = vmatprep.subr.bf16.mxu1 %v9782_v11 }
 0x264   : > { %6751 = vmatpush3.bf16.xpose.msra.mxu0 %v9781_v20 }
 0x265   : > { %6943 = vmatpush3.bf16.xpose.msra.mxu1 %v9782_v11  ;;  %6753 = vmatprep.subr.bf16.mxu0 %v9783_v42 }
 0x266   : > { %6945 = vmatprep.subr.bf16.mxu1 %v9784_v18 }
 0x26c   : > { %6755 = vmatpush3.bf16.xpose.msra.mxu0 %v9783_v42 }
 0x26d   : > { %6947 = vmatpush3.bf16.xpose.msra.mxu1 %v9784_v18  ;;  %6757 = vmatprep.subr.bf16.mxu0 %v9647_v0 }
 0x26e   : > { %6949 = vmatprep.subr.bf16.mxu1 %v9648_v2 }
 0x273   : > { %5869 = vmatmul.mubr.f32.vlgmr.msra.gmra.mrb[8].mxu0 %v8769_v28 }
 0x274   : > { %6759 = vmatpush3.bf16.xpose.msra.mxu0 %v9647_v0  ;;  %6133 = vmatmul.mubr.f32.vlgmr.msra.gmra.mrb[8].mxu1 %v8776_v51 }
 0x275   : > { %6951 = vmatpush3.bf16.xpose.msra.mxu1 %v9648_v2  ;;  %6761 = vmatprep.subr.bf16.mxu0 %v9650_v9 }
 0x276   : > { %6953 = vmatprep.subr.bf16.mxu1 %v9651_v21  ;;  %5871 = vmatprep.mubr.f32.mxu0 %v8812_v55 }
 0x277   : > { %6135 = vmatprep.mubr.f32.mxu1 %v8815_v44  ;;  %5872 = vmatmul.mubr.f32.gmra.mrb[10].mxu0 %v8821_v45 }
 0x278   : > { %6136 = vmatmul.mubr.f32.gmra.mrb[10].mxu1 %v8824_v49  ;;  %5874 = vmatprep.mubr.f32.mxu0 %v8830_v17 }
 0x279   : > { %6138 = vmatprep.mubr.f32.mxu1 %v8840_v38 }
 0x27b   : > { %5875 = vmatmul.mubr.f32.gmra.mrb[12].mxu0 %v8852_v47 }
 0x27c   : > { %6763 = vmatpush3.bf16.xpose.msra.mxu0 %v9650_v9  ;;  %6139 = vmatmul.mubr.f32.gmra.mrb[12].mxu1 %v8862_v57 }
 0x27d   : > { %6955 = vmatpush3.bf16.xpose.msra.mxu1 %v9651_v21  ;;  %6765 = vmatprep.subr.bf16.mxu0 %v9654_v32 }
 0x27e   : > { %6957 = vmatprep.subr.bf16.mxu1 %v9655_v58  ;;  %5877 = vmatprep.mubr.f32.mxu0 %v8877_v25 }
 0x27f   : > { %6141 = vmatprep.mubr.f32.mxu1 %v8884_v60  ;;  %5878 = vmatmul.mubr.f32.gmra.mrb[14].mxu0 %v8887_v43 }
 0x280   : > { %6142 = vmatmul.mubr.f32.gmra.mrb[14].mxu1 %v8897_v6  ;;  %5912 = vmatprep.mubr.f32.mxu0 %v9785_v56 }
 0x281   : > { %6176 = vmatprep.mubr.f32.mxu1 %v9786_v12 }
 0x284   : > { %6767 = vmatpush3.bf16.xpose.msra.mxu0 %v9654_v32 }
 0x285   : > { %6959 = vmatpush3.bf16.xpose.msra.mxu1 %v9655_v58  ;;  %6769 = vmatprep.subr.bf16.mxu0 %v9657_v37 }
 0x286   : > { %v5474_v14 = vpop.f32.mrb[0].mxu0  ;;  %6961 = vmatprep.subr.bf16.mxu1 %v9658_v5 }
 0x287   : > { %v7044_v24 = vadd.f32 %v5474_v14, %v334_v31  ;;  %v5738_v23 = vpop.f32.mrb[0].mxu1  ;;  %v1335_v20 = vpop.f32.mrb[1].mxu0 }
 0x288   : > { %v7052_v11 = vadd.f32 %v5738_v23, %v334_v31  ;;  %v7045_v3 = vadd.f32 %v1335_v20, %v329_v16  ;;  %v2333_v42 = vpop.f32.mrb[1].mxu1  ;;  %v2405_v31 = vpop.permute.xlu0 %2404 }
 0x289   : > { %v1382_v18 = vmax.f32 %v7044_v24, 0.0  ;;  %v7053_v4 = vadd.f32 %v2333_v42, %v329_v16 }
 0x28a   : > { %v2380_v56 = vmax.f32 %v7052_v11, 0.0  ;;  %v1381_v12 = vmax.f32 %v7045_v3, 0.0  ;;  %v5477_v27 = vpop.f32.mrb[2].mxu0  ;;  %v9787_v3 = vld [vmem:[#allocation20_spill] sm:$0xff] }
 0x28b   : > { %v2420_v34 = vmul.f32 %v2393_v41, %v1382_v18  ;;  %v2379_v1 = vmax.f32 %v7053_v4, 0.0  ;;  %v7046_v13 = vadd.f32 %v5477_v27, %v344_v35  ;;  %v5741_v46 = vpop.f32.mrb[2].mxu1  ;;  %v1347_v36 = vpop.f32.mrb[3].mxu0 }
 0x28c   : > { %v2449_v62 = vmul.f32 %v2393_v41, %v2380_v56  ;;  %v2419_v58 = vmul.f32 %v2389_v50, %v1381_v12  ;;  %v7054_v32 = vadd.f32 %v5741_v46, %v344_v35  ;;  %v7047_v14 = vadd.f32 %v1347_v36, %v9003_v22  ;;  %v2345_v15 = vpop.f32.mrb[3].mxu1  ;;  %6771 = vmatpush3.bf16.xpose.msra.mxu0 %v9657_v37 }
 0x28d   : > { %v2448_v24 = vmul.f32 %v2389_v50, %v2379_v1  ;;  %v1384_v16 = vmax.f32 %v7046_v13, 0.0  ;;  %v7055_v23 = vadd.f32 %v2345_v15, %v9003_v22  ;;  %6963 = vmatpush3.bf16.xpose.msra.mxu1 %v9658_v5  ;;  %6773 = vmatprep.subr.bf16.mxu0 %v9659_v26  ;;  %v364_v15 = vpop.permute.xlu1 %363 }
 0x28e   : > { %v2427_v27 = vadd.f32 %v2420_v34, %v2419_v58  ;;  %v2382_v20 = vmax.f32 %v7054_v32, 0.0  ;;  %v1383_v11 = vmax.f32 %v7047_v14, 0.0  ;;  %v5480_v41 = vpop.f32.mrb[4].mxu0  ;;  %6965 = vmatprep.subr.bf16.mxu1 %v9787_v3  ;;  %v2409_v14 = vpop.permute.xlu0 %2408 }
 0x28f   : > { %v2456_v46 = vadd.f32 %v2449_v62, %v2448_v24  ;;  %v2381_v36 = vmax.f32 %v7055_v23, 0.0  ;;  %v7048_v35 = vadd.f32 %v5480_v41, %v354_v48  ;;  %v5744_v42 = vpop.f32.mrb[4].mxu1  ;;  %v1359_v18 = vpop.f32.mrb[5].mxu0  ;;  %v2422_v22 = vmul.f32 %v2401_v59, %v1384_v16  ;;  %v9788_v16 = vld [vmem:[#allocation24_spill] sm:$0xff] }
 0x290   : > { %v2421_v4 = vmul.f32 %v2397_v30, %v1383_v11  ;;  %v7056_v1 = vadd.f32 %v5744_v42, %v354_v48  ;;  %v7049_v13 = vadd.f32 %v1359_v18, %v349_v61  ;;  %v2357_v50 = vpop.f32.mrb[5].mxu1  ;;  %v2451_v5 = vmul.f32 %v2401_v59, %v2382_v20 }
 0x291   : > { %v2450_v56 = vmul.f32 %v2397_v30, %v2381_v36  ;;  %v7057_v12 = vadd.f32 %v2357_v50, %v349_v61  ;;  %v1386_v32 = vmax.f32 %v7048_v35, 0.0  ;;  %v2413_v36 = vpop.permute.xlu1 %2412 }
 0x292   : > { %v2428_v58 = vadd.f32 %v2427_v27, %v2421_v4  ;;  %v1385_v34 = vmax.f32 %v7049_v13, 0.0  ;;  %v5483_v37 = vpop.f32.mrb[6].mxu0  ;;  %v2384_v62 = vmax.f32 %v7056_v1, 0.0 }
 0x293   : > { %v2457_v63 = vadd.f32 %v2456_v46, %v2450_v56  ;;  %v2383_v24 = vmax.f32 %v7057_v12, 0.0  ;;  %v7050_v23 = vadd.f32 %v5483_v37, %v364_v15  ;;  %v5747_v41 = vpop.f32.mrb[6].mxu1  ;;  %v1371_v7 = vpop.f32.mrb[7].mxu0  ;;  %v2424_v20 = vmul.f32 %v2409_v14, %v1386_v32  ;;  %v9789_v37 = vld [vmem:[#allocation25_spill] sm:$0xff]  ;;  %v9790_v32 = vld [vmem:[#allocation40_spill] sm:$0xff] }
 0x294   : > { %v2423_v11 = vmul.f32 %v2405_v31, %v1385_v34  ;;  %v2429_v48 = vadd.f32 %v2428_v58, %v2422_v22  ;;  %v7058_v42 = vadd.f32 %v5747_v41, %v364_v15  ;;  %v2369_v18 = vpop.f32.mrb[7].mxu1  ;;  %6775 = vmatpush3.bf16.xpose.msra.mxu0 %v9659_v26  ;;  %v7051_v59 = vadd.f32 %v1371_v7, %v359_v40  ;;  %v9794_v41 = vld [vmem:[#allocation21_spill] sm:$0xff] }
 0x295   : > { %v2452_v30 = vmul.f32 %v2405_v31, %v2383_v24  ;;  %v2458_v61 = vadd.f32 %v2457_v63, %v2451_v5  ;;  %6967 = vmatpush3.bf16.xpose.msra.mxu1 %v9787_v3  ;;  %6777 = vmatprep.subr.bf16.mxu0 %v9788_v16  ;;  %v7059_v46 = vadd.f32 %v2369_v18, %v359_v40  ;;  %v1388_v1 = vmax.f32 %v7050_v23, 0.0  ;;  %v2417_v31 = vpop.permute.xlu0 %2416  ;;  %v9792_v24 = vld [vmem:[#allocation48_spill] sm:$0xff]  ;;  %v9793_v23 = vld [vmem:[#allocation50_spill] sm:$0xff]  ;;  %v9798_v18 = vld [vmem:[#allocation23_spill] sm:$0xff] }
 0x296   : > { %v2430_v27 = vadd.f32 %v2429_v48, %v2423_v11  ;;  %6969 = vmatprep.subr.bf16.mxu1 %v9789_v37  ;;  %v2453_v4 = vmul.f32 %v2409_v14, %v2384_v62  ;;  %v1387_v13 = vmax.f32 %v7051_v59, 0.0  ;;  %v2386_v15 = vmax.f32 %v7058_v42, 0.0  ;;  %v9791_v62 = vld [vmem:[#allocation42_spill] sm:$0xff] }
 0x297   : > { %v2459_v35 = vadd.f32 %v2458_v61, %v2452_v30  ;;  %v2385_v22 = vmax.f32 %v7059_v46, 0.0  ;;  %v2426_v56 = vmul.f32 %v2417_v31, %v1388_v1  ;;  %v9795_v11 = vld [vmem:[#allocation22_spill] sm:$0xff]  ;;  %v9796_v48 = vand.u32 4294901760, %v8769_v28  ;;  %v9799_v30 = vld [vmem:[#allocation32_spill] sm:$0xff] }
 0x298   : > { %v2431_v50 = vadd.f32 %v2430_v27, %v2424_v20  ;;  %v2425_v63 = vmul.f32 %v2413_v36, %v1387_v13  ;;  %v2455_v58 = vmul.f32 %v2417_v31, %v2386_v15  ;;  %v9797_v42 = vand.u32 4294901760, %v8776_v51  ;;  %v9820_v1 = vld [vmem:[#allocation10_spill] sm:$0xff]  ;;  %v9823_v15 = vld [vmem:[#allocation11_spill] sm:$0xff] }
 0x299   : > { %v2460_v5 = vadd.f32 %v2459_v35, %v2453_v4  ;;  %v2454_v7 = vmul.f32 %v2413_v36, %v2385_v22  ;;  %v9800_v61 = vand.u32 4294901760, %v8812_v55  ;;  %v9801_v59 = vand.u32 4294901760, %v8815_v44  ;;  %v9814_v36 = vld [vmem:[#allocation27_spill] sm:$0xff]  ;;  %v9819_v4 = vld [vmem:[#allocation28_spill] sm:$0xff]  ;;  %v9821_v13 = vld [vmem:[#allocation30_spill] sm:$0xff] }
 0x29a   : > { %v2432_v12 = vadd.f32 %v2431_v50, %v2425_v63  ;;  %v9802_v28 = vand.u32 4294901760, %v8821_v45  ;;  %v9803_v27 = vand.u32 4294901760, %v8824_v49  ;;  %v9804_v51 = vand.u32 4294901760, %v8830_v17  ;;  %v9808_v45 = vld [vmem:[#allocation34_spill] sm:$0xff]  ;;  %v9809_v49 = vld [vmem:[#allocation35_spill] sm:$0xff]  ;;  %v9822_v50 = vld [vmem:[#allocation36_spill] sm:$0xff] }
 0x29b   : > { %v2461_v34 = vadd.f32 %v2460_v5, %v2454_v7  ;;  %v9805_v20 = vand.u32 4294901760, %v8840_v38  ;;  %v9806_v46 = vand.u32 4294901760, %v8852_v47  ;;  %v9807_v55 = vand.u32 4294901760, %v8862_v57  ;;  %v9824_v22 = vld [vmem:[#allocation12_spill] sm:$0xff]  ;;  %v9825_v31 = vld [vmem:[#allocation38_spill] sm:$0xff]  ;;  %v9826_v5 = vld [vmem:[#allocation39_spill] sm:$0xff] }
 0x29c   : > { %6779 = vmatpush3.bf16.xpose.msra.mxu0 %v9788_v16  ;;  %v9049_v40 = vadd.f32 %v2432_v12, %v2426_v56  ;;  %v9810_v44 = vand.u32 4294901760, %v8877_v25  ;;  %v9811_v17 = vand.u32 4294901760, %v8884_v60  ;;  %v9812_v47 = vand.u32 4294901760, %v8887_v43  ;;  %v9815_v25 = vld [vmem:[#allocation29_spill] sm:$0xff]  ;;  %v9827_v63 = vld [vmem:[#allocation31_spill] sm:$0xff] }
 0x29d   : > { %6971 = vmatpush3.bf16.xpose.msra.mxu1 %v9789_v37  ;;  %6781 = vmatprep.subr.bf16.mxu0 %v9790_v32  ;;  %v9053_v14 = vadd.f32 %v2461_v34, %v2455_v58  ;;  %v9813_v38 = vand.u32 4294901760, %v8897_v6  ;;  %v7380_v57 = vmov 2   ;;  %v9816_v60 = vld [vmem:[#allocation13_spill] sm:$0xff]  ;;  %v9818_v6 = vld [vmem:[#allocation26_spill] sm:$0xff]  ;;  %v7381_v35 = vmov 3   ;;  %v9830_v12 = vld [vmem:[#allocation15_spill] sm:$0xff] }
 0x29e   : > { %6973 = vmatprep.subr.bf16.mxu1 %v9791_v62  ;;  %7280 = vset.pattern.permute.xlu1 %v7380_v57  ;;  %v9817_v43 = vld [vmem:[#allocation9_spill] sm:$0xff]  ;;  %v9831_v58 = vld [vmem:[#allocation19_spill] sm:$0xff] }
 0x29f   : > { %4433 = vperm.xlu1 %7280, %v9814_v36   ;;  %7281 = vset.pattern.permute.xlu0 %v7380_v57  ;;  %v9828_v7 = vld [vmem:[#allocation33_spill] sm:$0xff] }
 0x2a0   : > { %4437 = vperm.xlu0 %7281, %v9815_v25   ;;  %v9829_v56 = vld [vmem:[#allocation41_spill] sm:$0xff] }
 0x2a1   : > { %v9832_v34 = vld [vmem:[#allocation37_spill] sm:$0xff] }
 0x2a3   : > { %4441 = vperm.xlu1 %7280, %v9818_v6  }
 0x2a4   : > { %6783 = vmatpush3.bf16.xpose.msra.mxu0 %v9790_v32  ;;  %7282 = vset.pattern.permute.xlu0 %v7381_v35 }
 0x2a5   : > { %6975 = vmatpush3.bf16.xpose.msra.mxu1 %v9791_v62  ;;  %6785 = vmatprep.subr.bf16.mxu0 %v9792_v24 }
 0x2a6   : > { %6977 = vmatprep.subr.bf16.mxu1 %v9793_v23  ;;  %4481 = vperm.xlu0 %7282, %v9814_v36  }
 0x2a7   : > { %4445 = vperm.xlu1 %7280, %v9819_v4  }
 0x2aa   : > { %4489 = vperm.xlu0 %7282, %v9818_v6  }
 0x2ab   : > { %7283 = vset.pattern.permute.xlu1 %v7381_v35 }
 0x2ac   : > { %6787 = vmatpush3.bf16.xpose.msra.mxu0 %v9792_v24  ;;  %4485 = vperm.xlu1 %7283, %v9815_v25  }
 0x2ad   : > { %6979 = vmatpush3.bf16.xpose.msra.mxu1 %v9793_v23  ;;  %6789 = vmatprep.subr.bf16.mxu0 %v9794_v41 }
 0x2ae   : > { %6981 = vmatprep.subr.bf16.mxu1 %v9795_v11  ;;  %4493 = vperm.xlu0 %7282, %v9819_v4  }
 0x2b0   : > { %7284 = vset.pattern.permute.xlu1 %v7380_v57 }
 0x2b1   : > { %4449 = vperm.xlu1 %7284, %v9822_v50  }
 0x2b2   : > { %4497 = vperm.xlu0 %7282, %v9822_v50  }
 0x2b3   : > { %5913 = vmatmul.mubr.f32.vlgmr.msra.gmra.mrb[8].mxu0 %v9796_v48  ;;  %v9837_v48 = vld [vmem:[#allocation52_spill] sm:$0xff] }
 0x2b4   : > { %6791 = vmatpush3.bf16.xpose.msra.mxu0 %v9794_v41  ;;  %6177 = vmatmul.mubr.f32.vlgmr.msra.gmra.mrb[8].mxu1 %v9797_v42  ;;  %v9835_v41 = vld [vmem:[#allocation14_spill] sm:$0xff]  ;;  %v9838_v42 = vld [vmem:[#allocation47_spill] sm:$0xff] }
 0x2b5   : > { %6983 = vmatpush3.bf16.xpose.msra.mxu1 %v9795_v11  ;;  %6793 = vmatprep.subr.bf16.mxu0 %v9798_v18  ;;  %v9836_v11 = vld [vmem:[#allocation16_spill] sm:$0xff] }
 0x2b6   : > { %6985 = vmatprep.subr.bf16.mxu1 %v9799_v30  ;;  %5915 = vmatprep.mubr.f32.mxu0 %v9800_v61 }
 0x2b7   : > { %6179 = vmatprep.mubr.f32.mxu1 %v9801_v59  ;;  %5916 = vmatmul.mubr.f32.gmra.mrb[10].mxu0 %v9802_v28 }
 0x2b8   : > { %6180 = vmatmul.mubr.f32.gmra.mrb[10].mxu1 %v9803_v27  ;;  %5918 = vmatprep.mubr.f32.mxu0 %v9804_v51 }
 0x2b9   : > { %6182 = vmatprep.mubr.f32.mxu1 %v9805_v20  ;;  %4453 = vperm.xlu1 %7284, %v9825_v31  }
 0x2ba   : > { %4501 = vperm.xlu0 %7282, %v9825_v31  }
 0x2bb   : > { %5919 = vmatmul.mubr.f32.gmra.mrb[12].mxu0 %v9806_v46 }
 0x2bc   : > { %6795 = vmatpush3.bf16.xpose.msra.mxu0 %v9798_v18  ;;  %6183 = vmatmul.mubr.f32.gmra.mrb[12].mxu1 %v9807_v55  ;;  %v9839_v18 = vld [vmem:[#allocation51_spill] sm:$0xff] }
 0x2bd   : > { %6987 = vmatpush3.bf16.xpose.msra.mxu1 %v9799_v30  ;;  %6797 = vmatprep.subr.bf16.mxu0 %v9808_v45  ;;  %v9840_v30 = vld [vmem:[#allocation54_spill] sm:$0xff] }
 0x2be   : > { %6989 = vmatprep.subr.bf16.mxu1 %v9809_v49  ;;  %5921 = vmatprep.mubr.f32.mxu0 %v9810_v44 }
 0x2bf   : > { %6185 = vmatprep.mubr.f32.mxu1 %v9811_v17  ;;  %5922 = vmatmul.mubr.f32.gmra.mrb[14].mxu0 %v9812_v47 }
 0x2c0   : > { %6186 = vmatmul.mubr.f32.gmra.mrb[14].mxu1 %v9813_v38  ;;  %5956 = vmatprep.mubr.f32.mxu0 %v8675_v53 }
 0x2c1   : > { %6220 = vmatprep.mubr.f32.mxu1 %v8679_v54  ;;  %4457 = vperm.xlu1 %7284, %v9826_v5  }
 0x2c2   : > { %4509 = vperm.xlu0 %7282, %v9829_v56  }
 0x2c4   : > { %6799 = vmatpush3.bf16.xpose.msra.mxu0 %v9808_v45 }
 0x2c5   : > { %6991 = vmatpush3.bf16.xpose.msra.mxu1 %v9809_v49  ;;  %6801 = vmatprep.subr.bf16.mxu0 %v9816_v60 }
 0x2c6   : > { %6993 = vmatprep.subr.bf16.mxu1 %v9817_v43  ;;  %4461 = vperm.xlu1 %7284, %v9829_v56  }
 0x2ca   : > { %7285 = vset.pattern.permute.xlu1 %v7381_v35 }
 0x2cb   : > { %4505 = vperm.xlu1 %7285, %v9826_v5  }
 0x2cc   : > { %6803 = vmatpush3.bf16.xpose.msra.mxu0 %v9816_v60 }
 0x2cd   : > { %6995 = vmatpush3.bf16.xpose.msra.mxu1 %v9817_v43  ;;  %6805 = vmatprep.subr.bf16.mxu0 %v9820_v1 }
 0x2ce   : > { %6997 = vmatprep.subr.bf16.mxu1 %v9821_v13 }
 0x2d4   : > { %6807 = vmatpush3.bf16.xpose.msra.mxu0 %v9820_v1 }
 0x2d5   : > { %6999 = vmatpush3.bf16.xpose.msra.mxu1 %v9821_v13  ;;  %6809 = vmatprep.subr.bf16.mxu0 %v9823_v15 }
 0x2d6   : > { %7001 = vmatprep.subr.bf16.mxu1 %v9824_v22 }
 0x2dc   : > { %6811 = vmatpush3.bf16.xpose.msra.mxu0 %v9823_v15 }
 0x2dd   : > { %7003 = vmatpush3.bf16.xpose.msra.mxu1 %v9824_v22  ;;  %6813 = vmatprep.subr.bf16.mxu0 %v9827_v63 }
 0x2de   : > { %7005 = vmatprep.subr.bf16.mxu1 %v9828_v7 }
 0x2e4   : > { %6815 = vmatpush3.bf16.xpose.msra.mxu0 %v9827_v63 }
 0x2e5   : > { %7007 = vmatpush3.bf16.xpose.msra.mxu1 %v9828_v7  ;;  %6817 = vmatprep.subr.bf16.mxu0 %v9830_v12 }
 0x2e6   : > { %7009 = vmatprep.subr.bf16.mxu1 %v9831_v58 }
 0x2ec   : > { %6819 = vmatpush3.bf16.xpose.msra.mxu0 %v9830_v12 }
 0x2ed   : > { %7011 = vmatpush3.bf16.xpose.msra.mxu1 %v9831_v58  ;;  %6821 = vmatprep.subr.bf16.mxu0 %v9647_v0 }
 0x2ee   : > { %7013 = vmatprep.subr.bf16.mxu1 %v9648_v2 }
 0x2f3   : > { %5957 = vmatmul.mubr.f32.vlgmr.msra.gmra.mrb[8].mxu0 %v8747_v19 }
 0x2f4   : > { %6823 = vmatpush3.bf16.xpose.msra.mxu0 %v9647_v0  ;;  %6221 = vmatmul.mubr.f32.vlgmr.msra.gmra.mrb[8].mxu1 %v8756_v33  ;;  %v9833_v0 = vld [vmem:[#allocation45_spill] sm:$0xff] }
 0x2f5   : > { %7015 = vmatpush3.bf16.xpose.msra.mxu1 %v9648_v2  ;;  %6825 = vmatprep.subr.bf16.mxu0 %v9650_v9  ;;  %v9834_v2 = vld [vmem:[#allocation46_spill] sm:$0xff] }
 0x2f6   : > { %7017 = vmatprep.subr.bf16.mxu1 %v9651_v21  ;;  %5959 = vmatprep.mubr.f32.mxu0 %v8778_v52 }
 0x2f7   : > { %6223 = vmatprep.mubr.f32.mxu1 %v8780_v10  ;;  %5960 = vmatmul.mubr.f32.gmra.mrb[10].mxu0 %v8786_v29 }
 0x2f8   : > { %6224 = vmatmul.mubr.f32.gmra.mrb[10].mxu1 %v8788_v39  ;;  %5962 = vmatprep.mubr.f32.mxu0 %v8791_v8 }
 0x2f9   : > { %6226 = vmatprep.mubr.f32.mxu1 %v9832_v34 }
 0x2fb   : > { %5963 = vmatmul.mubr.f32.gmra.mrb[12].mxu0 %v9833_v0 }
 0x2fc   : > { %6827 = vmatpush3.bf16.xpose.msra.mxu0 %v9650_v9  ;;  %6227 = vmatmul.mubr.f32.gmra.mrb[12].mxu1 %v9834_v2  ;;  %v9841_v9 = vld [vmem:[#allocation17_spill] sm:$0xff] }
 0x2fd   : > { %7019 = vmatpush3.bf16.xpose.msra.mxu1 %v9651_v21  ;;  %6829 = vmatprep.subr.bf16.mxu0 %v9835_v41  ;;  %v9842_v21 = vld [vmem:[#allocation18_spill] sm:$0xff] }
 0x2fe   : > { %7021 = vmatprep.subr.bf16.mxu1 %v9836_v11  ;;  %5965 = vmatprep.mubr.f32.mxu0 %v9837_v48 }
 0x2ff   : > { %6229 = vmatprep.mubr.f32.mxu1 %v9838_v42  ;;  %5966 = vmatmul.mubr.f32.gmra.mrb[14].mxu0 %v9839_v18 }
 0x300   : > { %6230 = vmatmul.mubr.f32.gmra.mrb[14].mxu1 %v9840_v30  ;;  %6000 = vmatprep.mubr.f32.mxu0 %v8675_v53  ;;  %v2463_v53 = vrot.slane %v9053_v14, 4 }
 0x301   : > { %6264 = vmatprep.mubr.f32.mxu1 %v8679_v54 }
 0x304   : > { %6831 = vmatpush3.bf16.xpose.msra.mxu0 %v9835_v41 }
 0x305   : > { %7023 = vmatpush3.bf16.xpose.msra.mxu1 %v9836_v11  ;;  %6833 = vmatprep.subr.bf16.mxu0 %v9841_v9 }
 0x306   : > { %7025 = vmatprep.subr.bf16.mxu1 %v9842_v21 }
 0x30c   : > { %6835 = vmatpush3.bf16.xpose.msra.mxu0 %v9841_v9 }
 0x30d   : > { %7027 = vmatpush3.bf16.xpose.msra.mxu1 %v9842_v21  ;;  %6837 = vmatprep.subr.bf16.mxu0 %v9659_v26 }
 0x30e   : > { %7029 = vmatprep.subr.bf16.mxu1 %v9787_v3 }
 0x314   : > { %6839 = vmatpush3.bf16.xpose.msra.mxu0 %v9659_v26  ;;  %v2434_v26 = vrot.slane %v9049_v40, 4 }
 0x315   : > { %7031 = vmatpush3.bf16.xpose.msra.mxu1 %v9787_v3  ;;  %6841 = vmatprep.subr.bf16.mxu0 %v9788_v16 }
 0x316   : > { %7033 = vmatprep.subr.bf16.mxu1 %v9789_v37  ;;  %v2435_v54 = vadd.f32 %v2434_v26, %v9049_v40 }
 0x31c   : > { %6843 = vmatpush3.bf16.xpose.msra.mxu0 %v9788_v16  ;;  %v2440_v16 = vstv %s324_s23 }
 0x31d   : > { %7035 = vmatpush3.bf16.xpose.msra.mxu1 %v9789_v37  ;;  %6845 = vmatprep.subr.bf16.mxu0 %v9790_v32 }
 0x31e   : > { %7037 = vmatprep.subr.bf16.mxu1 %v9791_v62  ;;  %v4434_v61 = vpop.permute.xlu1 %4433 }
 0x31f   : > { %v4438_v20 = vpop.permute.xlu0 %4437 }
 0x322   : > { %v4442_v40 = vpop.permute.xlu1 %4441 }
 0x324   : > { %6847 = vmatpush3.bf16.xpose.msra.mxu0 %v9790_v32 }
 0x325   : > { %7039 = vmatpush3.bf16.xpose.msra.mxu1 %v9791_v62  ;;  %6849 = vmatprep.subr.bf16.mxu0 %v9792_v24  ;;  %v4482_v55 = vpop.permute.xlu0 %4481 }
 0x326   : > { %7041 = vmatprep.subr.bf16.mxu1 %v9793_v23  ;;  %v4446_v27 = vpop.permute.xlu1 %4445 }
 0x329   : > { %v4490_v44 = vpop.permute.xlu0 %4489 }
 0x32b   : > { %v4486_v46 = vpop.permute.xlu1 %4485 }
 0x32c   : > { %6851 = vmatpush3.bf16.xpose.msra.mxu0 %v9792_v24 }
 0x32d   : > { %7043 = vmatpush3.bf16.xpose.msra.mxu1 %v9793_v23  ;;  %v4494_v31 = vpop.permute.xlu0 %4493 }
 0x330   : > { %v4450_v45 = vpop.permute.xlu1 %4449 }
 0x333   : > { %6001 = vmatmul.mubr.f32.vlgmr.msra.gmra.mrb[8].mxu0 %v8747_v19 }
 0x334   : > { %6265 = vmatmul.mubr.f32.vlgmr.msra.gmra.mrb[8].mxu1 %v8756_v33  ;;  %6003 = vmatprep.mubr.f32.mxu0 %v8778_v52 }
 0x335   : > { %6267 = vmatprep.mubr.f32.mxu1 %v8780_v10  ;;  %v2436_v10 = vrot.slane %v2435_v54, 2 }
 0x337   : > { %6004 = vmatmul.mubr.f32.gmra.mrb[10].mxu0 %v8786_v29  ;;  %v2437_v33 = vadd.f32 %v2436_v10, %v2435_v54 }
 0x338   : > { %6268 = vmatmul.mubr.f32.gmra.mrb[10].mxu1 %v8788_v39  ;;  %6006 = vmatprep.mubr.f32.mxu0 %v8791_v8  ;;  %v2464_v8 = vadd.f32 %v2463_v53, %v9053_v14  ;;  %v4454_v35 = vpop.permute.xlu1 %4453 }
 0x339   : > { %6270 = vmatprep.mubr.f32.mxu1 %v9832_v34  ;;  %v2438_v29 = vrot.slane %v2437_v33, 1 }
 0x33a   : > { %v2465_v19 = vrot.slane %v2464_v8, 2 }
 0x33b   : > { %6007 = vmatmul.mubr.f32.gmra.mrb[12].mxu0 %v9833_v0  ;;  %v2439_v3 = vadd.f32 %v2438_v29, %v2437_v33  ;;  %v4498_v33 = vpop.permute.xlu0 %4497 }
 0x33c   : > { %6271 = vmatmul.mubr.f32.gmra.mrb[12].mxu1 %v9834_v2  ;;  %6009 = vmatprep.mubr.f32.mxu0 %v9837_v48  ;;  %v2466_v52 = vadd.f32 %v2465_v19, %v2464_v8 }
 0x33d   : > { %6273 = vmatprep.mubr.f32.mxu1 %v9838_v42  ;;  %v2441_v32 = vadd.f32 %v2440_v16, %v2439_v3 }
 0x33e   : > { %v2467_v39 = vrot.slane %v2466_v52, 1 }
 0x33f   : > { %6010 = vmatmul.mubr.f32.gmra.mrb[14].mxu0 %v9839_v18  ;;  %v4639_v24 = vmul.f32 -1.442695, %v2441_v32 }
 0x340   : > { %6274 = vmatmul.mubr.f32.gmra.mrb[14].mxu1 %v9840_v30  ;;  %v2468_v37 = vadd.f32 %v2467_v39, %v2466_v52  ;;  %v4458_v30 = vpop.permute.xlu1 %4457 }
 0x341   : > { %7286 = vpow2.f32 %v4639_v24 }
 0x342   : > { %v2469_v62 = vadd.f32 %v2468_v37, %v2440_v16 }
 0x344   : > { %v4640_v23 = vmul.f32 -1.442695, %v2469_v62 }
 0x346   : > { %7288 = vpow2.f32 %v4640_v23 }
 0x34b   : > { %v7287_v59 = vpop.eup %7286 }
 0x34c   : > { %v2445_v28 = vadd.f32 1.0, %v7287_v59 }
 0x34e   : > { %7290 = vrcp.f32 %v2445_v28 }
 0x350   : > { %v7289_v14 = vpop.eup %7288 }
 0x351   : > { %v2473_v51 = vadd.f32 1.0, %v7289_v14 }
 0x353   : > { %7292 = vrcp.f32 %v2473_v51 }
 0x358   : > { %v7291_v49 = vpop.eup %7290 }
 0x35d   : > { %v7293_v47 = vpop.eup %7292 }
 0x406   : > { %v6002_v17 = vpop.f32.mrb[8].mxu0 }
 0x407   : > { %v4409_v38 = vmul.f32 %v7291_v49, %v6002_v17  ;;  %v6266_v57 = vpop.f32.mrb[8].mxu1  ;;  %v3396_v36 = vpop.f32.mrb[9].mxu0 }
 0x408   : > { %v4417_v25 = vmul.f32 %v7293_v47, %v6266_v57  ;;  %v4408_v60 = vmul.f32 %v7291_v49, %v3396_v36  ;;  %v4362_v43 = vpop.f32.mrb[9].mxu1  ;;  %v4502_v36 = vpop.permute.xlu0 %4501 }
 0x409   : > { %v4416_v6 = vmul.f32 %v7293_v47, %v4362_v43 }
 0x40a   : > { %v4425_v4 = vadd.f32 %v4417_v25, %v4409_v38  ;;  %v6005_v1 = vpop.f32.mrb[10].mxu0 }
 0x40b   : > { %v4424_v13 = vadd.f32 %v4416_v6, %v4408_v60  ;;  %v4411_v50 = vmul.f32 %v7291_v49, %v6005_v1  ;;  %v6269_v15 = vpop.f32.mrb[10].mxu1  ;;  %v3408_v22 = vpop.f32.mrb[11].mxu0 }
 0x40c   : > { %v4465_v5 = vadd.f32 %v4438_v20, %v4425_v4  ;;  %v4419_v63 = vmul.f32 %v7293_v47, %v6269_v15  ;;  %v4410_v7 = vmul.f32 %v7291_v49, %v3408_v22  ;;  %v4374_v56 = vpop.f32.mrb[11].mxu1  ;;  %v4462_v20 = vpop.permute.xlu1 %4461 }
 0x40d   : > { %v4464_v12 = vadd.f32 %v4434_v61, %v4424_v13  ;;  %v4418_v58 = vmul.f32 %v7293_v47, %v4374_v56  ;;  %v4510_v13 = vpop.permute.xlu0 %4509 }
 0x40e   : > { %v4473_v34 = vmax.f32 %v4465_v5, 0.0  ;;  %v4427_v0 = vadd.f32 %v4419_v63, %v4411_v50  ;;  %v6008_v2 = vpop.f32.mrb[12].mxu0 }
 0x40f   : > { %v4472_v41 = vmax.f32 %v4464_v12, 0.0  ;;  %v4426_v11 = vadd.f32 %v4418_v58, %v4410_v7  ;;  %v4413_v48 = vmul.f32 %v7291_v49, %v6008_v2  ;;  %v6272_v42 = vpop.f32.mrb[12].mxu1  ;;  %v3420_v18 = vpop.f32.mrb[13].mxu0  ;;  %v4533_v12 = vstv %s4638_s26 }
 0x410   : > { %v4513_v9 = vmul.f32 %v4486_v46, %v4473_v34  ;;  %v4467_v21 = vadd.f32 %v4446_v27, %v4427_v0  ;;  %v4421_v26 = vmul.f32 %v7293_v47, %v6272_v42  ;;  %v4412_v53 = vmul.f32 %v7291_v49, %v3420_v18  ;;  %v4386_v54 = vpop.f32.mrb[13].mxu1 }
 0x411   : > { %v4512_v8 = vmul.f32 %v4482_v55, %v4472_v41  ;;  %v4466_v10 = vadd.f32 %v4442_v40, %v4426_v11  ;;  %v4420_v19 = vmul.f32 %v7293_v47, %v4386_v54 }
 0x412   : > { %v4475_v52 = vmax.f32 %v4467_v21, 0.0  ;;  %v4429_v29 = vadd.f32 %v4421_v26, %v4413_v48  ;;  %v6011_v39 = vpop.f32.mrb[14].mxu0 }
 0x413   : > { %v4520_v3 = vadd.f32 %v4513_v9, %v4512_v8  ;;  %v4474_v16 = vmax.f32 %v4466_v10, 0.0  ;;  %v4428_v37 = vadd.f32 %v4420_v19, %v4412_v53  ;;  %v4415_v32 = vmul.f32 %v7291_v49, %v6011_v39  ;;  %v6275_v62 = vpop.f32.mrb[14].mxu1  ;;  %v3432_v24 = vpop.f32.mrb[15].mxu0 }
 0x414   : > { %v4469_v23 = vadd.f32 %v4454_v35, %v4429_v29  ;;  %v4423_v61 = vmul.f32 %v7293_v47, %v6275_v62  ;;  %v4414_v59 = vmul.f32 %v7291_v49, %v3432_v24  ;;  %v4398_v14 = vpop.f32.mrb[15].mxu1  ;;  %v4515_v40 = vmul.f32 %v4494_v31, %v4475_v52  ;;  %v4506_v35 = vpop.permute.xlu1 %4505 }
 0x415   : > { %v4514_v28 = vmul.f32 %v4490_v44, %v4474_v16  ;;  %v4468_v27 = vadd.f32 %v4450_v45, %v4428_v37  ;;  %v4422_v51 = vmul.f32 %v7293_v47, %v4398_v14 }
 0x416   : > { %v4431_v46 = vadd.f32 %v4423_v61, %v4415_v32  ;;  %v4477_v17 = vmax.f32 %v4469_v23, 0.0 }
 0x417   : > { %v4521_v55 = vadd.f32 %v4520_v3, %v4514_v28  ;;  %v4476_v38 = vmax.f32 %v4468_v27, 0.0  ;;  %v4430_v57 = vadd.f32 %v4422_v51, %v4414_v59 }
 0x418   : > { %v4471_v25 = vadd.f32 %v4462_v20, %v4431_v46  ;;  %v4517_v1 = vmul.f32 %v4502_v36, %v4477_v17 }
 0x419   : > { %v4516_v60 = vmul.f32 %v4498_v33, %v4476_v38  ;;  %v4470_v43 = vadd.f32 %v4458_v30, %v4430_v57  ;;  %v4522_v6 = vadd.f32 %v4521_v55, %v4515_v40 }
 0x41a   : > { %v4479_v4 = vmax.f32 %v4471_v25, 0.0 }
 0x41b   : > { %v4478_v49 = vmax.f32 %v4470_v43, 0.0  ;;  %v4523_v44 = vadd.f32 %v4522_v6, %v4516_v60 }
 0x41c   : > { %v4519_v50 = vmul.f32 %v4510_v13, %v4479_v4 }
 0x41d   : > { %v4518_v45 = vmul.f32 %v4506_v35, %v4478_v49  ;;  %v4524_v47 = vadd.f32 %v4523_v44, %v4517_v1 }
 0x41f   : > { %v4525_v15 = vadd.f32 %v4524_v47, %v4518_v45 }
 0x421   : > { %v4526_v22 = vadd.f32 %v4525_v15, %v4519_v50 }
 0x423   : > { %v4527_v31 = vrot.slane %v4526_v22, 4 }
 0x425   : > { %v4528_v5 = vadd.f32 %v4527_v31, %v4526_v22 }
 0x427   : > { %v4529_v63 = vrot.slane %v4528_v5, 2 }
 0x429   : > { %v4530_v7 = vadd.f32 %v4529_v63, %v4528_v5 }
 0x42b   : > { %v4531_v56 = vrot.slane %v4530_v7, 1 }
 0x42d   : > { %v4532_v58 = vadd.f32 %v4531_v56, %v4530_v7 }
 0x42f   : > { %v4534_v34 = vadd.f32 %v4533_v12, %v4532_v58 }
 0x431   : > { %4535 = vst [vmem:[%s247_s6] sm:$0x1] %v4534_v34 }
 0x432   : > { %7322 = shalt.err (!%p7319_p2)
}
 0x433   : > { %s7323_s11 = scalar_lea.hbm %s9211_s10, 16  ;;  %s7327_s22 = scalar_lea.hbm %s9258_s5, 32 }
 0x434   : > { %p7324_p3 = scmp.ne.s32.totalorder %s9211_s10, %s7323_s11  ;;  %p7328_p8 = scmp.lt.u32.totalorder %s9211_s10, %s9258_s5 }
 0x435   : > { %p7329_p11 = scmp.lt.u32.totalorder %s7327_s22, %s7323_s11  ;;  %p7331_p10 = scmp.lt.u32.totalorder %s7323_s11, %s9211_s10 }
 0x436   : > { %p7325_p4 = pnand %p7324_p3, %p7451_p5 }
 0x437   : > { %p7330_p9 = por %p7329_p11, %p7328_p8 }
 0x438   : > { %p7326_p7 = pneg %p7325_p4 }
 0x439   : > { %p7332_p12 = por %p7331_p10, %p7330_p9 }
 0x43b   : > { %p7333_p13 = pnand %p7332_p12, %p7326_p7 }
 0x43d   : > { %7336 = shalt.err (!%p7333_p13)
}
 0x43e   : > { %7224 = dma.vmem_to_hbm [thread:$0]  (%p7451_p5), %s9213_s7, 16, %s9211_s10, %s4537_s12  }
 0x43f PF: > { %p7236_p0 = scmp.ge.s32.totalorder %s7375_s21, 2  ;;  %s4561_s30 = sand.u32 1, %s7363_s18  }
 0x440   : > { %s4562_s6 = scalar_lea.sflag [#allocation3], %s4561_s30 }
 0x441   : > { %p7231_p1 = pnand %p7236_p0, %p7455_p6 }
 0x443   : > { %7358 = dma.done.wait (!%p7231_p1), %s4562_s6, 16  }
 0x444   : > { %7360 = vsyncadd (!%p7231_p1), %s4562_s6, 4294967280  ;;  %p16_p2 = scmp.ge.s32.totalorder %s7438_s24, 4   ;;  %s9843_s18 = smov %s7367_s19 }
 0x445   : > { %s9844_s19 = smov %s7371_s20  ;;  %s9845_s20 = smov %s7449_s27 }
 0x446   : > { %s9846_s21 = smov %s7438_s24  ;;  %18 = sbr.rel (!%p16_p2) target bundleno = 4 (0x4), region = 83 }
 0x44d   :  { %4566 = vsyncpa [#allocation3], 1 }
 0x44e   :  { %4568 = vsyncpa [#allocation3 + $0x1], 1 }
 0x44f   :  { %4569 = vsyncpa [#allocation4], 1 }
 0x450   :  { %4571 = vsyncpa [#allocation4 + $0x1], 1 }

</bundles_post_ra>
